<compile_context>
chip_gen: v7x
topology: tpu7x:2x2x1
jax: 0.10.0
libtpu: 0.0.40
codegen_flags: <defaults>
</compile_context>

<pallas_src>
import jax
import jax.numpy as jnp
import numpy as np
from jax import lax
from jax.experimental import pallas as pl
from jax.experimental.pallas import tpu as pltpu


# ----------------------------- helpers --------------------------------------

def _round_up(x, m):
    return ((x + m - 1) // m) * m


def _make_w_upsample_matrix(w):
    """(W, W/2) 0/1 matrix Uw with Uw[x, x//2] = 1 (nearest-neighbour column dup)."""
    wc = w // 2
    u = np.zeros((w, wc), np.float32)
    u[np.arange(w), np.arange(w) // 2] = 1.0
    return jnp.asarray(u)


def _prep_level_params(p, cinp, cp, compute_dtype):
    """Pad weights to lane-dense channel widths; cast MXU operands to compute_dtype."""
    cin, cout = p["lw"].shape
    lw = jnp.zeros((cinp, cp), compute_dtype).at[:cin, :cout].set(
        p["lw"].astype(compute_dtype))
    lb = jnp.zeros((1, cp), jnp.float32).at[:, :cout].set(p["lb"][None, :])
    fw9 = p["fw"].reshape(9, cout, cout).astype(compute_dtype)   # (ky,kx) row-major
    fw = jnp.zeros((9, cp, cp), compute_dtype).at[:, :cout, :cout].set(fw9)
    fb = jnp.zeros((1, cp), jnp.float32).at[:, :cout].set(p["fb"][None, :])
    return {"lw": lw, "lb": lb, "fw": fw, "fb": fb}


def _pick_tile_rows(h, w, has_carry, requested):
    """Largest even tile height <= requested that divides H, with sublane-aligned
    halo row blocks (W % 8 == 0, and W/2 % 8 == 0 when a carry is consumed).
    Falls back to the full image height (always legal)."""
    if requested is None or requested >= h:
        return h
    if w % 8 != 0 or (has_carry and (w // 2) % 8 != 0):
        return h  # TODO(synk): halo blocks with unaligned W (pad rows host-side)
    th = (min(requested, h) // 2) * 2
    while th >= 2 and h % th != 0:
        th -= 2
    return th if th >= 2 else h


# --------------------------- fused per-level kernel --------------------------

def _make_level_kernel(th, w, wc, cp, *, has_carry, has_halo, write_carry, z_dtype):
    hw_t = th * w                  # interior rows of this H-tile (flattened)
    th_c = th // 2
    pad = 8                        # sublane-aligned slop above the top halo row
    top_off = pad
    interior = pad + w
    bot_off = pad + (th + 1) * w
    z_rows = (th + 2) * w + 2 * pad

    def kernel(*refs):
        it = iter(refs)
        x_ref = next(it)
        if has_halo:
            x_top_ref = next(it)
            x_bot_ref = next(it)
        if has_carry:
            carry_ref = next(it)
            if has_halo:
                c_top_ref = next(it)
                c_bot_ref = next(it)
            uw_ref = next(it)
        lw_ref = next(it)
        lb_ref = next(it)
        fw_ref = next(it)
        fb_ref = next(it)
        if write_carry:
            inner_ref = next(it)
        out_ref = next(it)
        z_scr = next(it)

        ti = pl.program_id(1)
        n_t = pl.num_programs(1)
        lw = lw_ref[...]
        lb = lb_ref[...]

        # ---- lateral 1x1 conv (MXU) written straight into the z scratch -----
        lat = jnp.dot(x_ref[0], lw, preferred_element_type=jnp.float32) + lb
        z_scr[pl.ds(interior, hw_t), :] = lat.astype(z_dtype)

        # ---- fused nearest-2x top-down upsample (no dense HWxHW/4 matrix) ---
        # Column dup = tiny (W, W/2) 0/1 dot per coarse row; row dup = write the
        # resulting row block into both fine rows of the pair.
        if has_carry:
            uw = uw_ref[...]

            def _add_up(i):
                src = carry_ref[0, pl.ds(i * wc, wc), :]                  # (Wc, Cp)
                row = jnp.dot(uw, src,
                              preferred_element_type=jnp.float32).astype(z_dtype)
                off = interior + 2 * i * w
                z_scr[pl.ds(off, w), :] = z_scr[pl.ds(off, w), :] + row
                z_scr[pl.ds(off + w, w), :] = z_scr[pl.ds(off + w, w), :] + row

            if th_c <= 16:                      # static, aligned slices at toy sizes
                for i in range(th_c):
                    _add_up(i)
            else:
                def _body(i, c):
                    _add_up(i)
                    return c
                lax.fori_loop(0, th_c, _body, 0)

        # ---- top-down carry for the next (finer) level -----------------------
        if write_carry:
            inner_ref[0] = z_scr[pl.ds(interior, hw_t), :].astype(inner_ref.dtype)

        # ---- halo rows: SAME zero padding at image borders, otherwise the
        #      neighbour tile's inner activation recomputed from one extra row --
        zrow = jnp.zeros((w, cp), z_dtype)

        def _halo_inner(xr_ref, cr_ref):
            hi = jnp.dot(xr_ref[0], lw, preferred_element_type=jnp.float32) + lb
            if has_carry:
                hi = hi + jnp.dot(uw_ref[...], cr_ref[0],
                                  preferred_element_type=jnp.float32)
            return hi.astype(z_dtype)

        if has_halo:
            @pl.when(ti == 0)
            def _():
                z_scr[pl.ds(top_off, w), :] = zrow

            @pl.when(ti > 0)
            def _():
                z_scr[pl.ds(top_off, w), :] = _halo_inner(
                    x_top_ref, c_top_ref if has_carry else None)

            @pl.when(ti == n_t - 1)
            def _():
                z_scr[pl.ds(bot_off, w), :] = zrow

            @pl.when(ti < n_t - 1)
            def _():
                z_scr[pl.ds(bot_off, w), :] = _halo_inner(
                    x_bot_ref, c_bot_ref if has_carry else None)
        else:
            z_scr[pl.ds(top_off, w), :] = zrow
            z_scr[pl.ds(bot_off, w), :] = zrow

        # Two slop rows only feed masked-out taps; keep them finite.
        zrow1 = jnp.zeros((1, cp), z_dtype)
        z_scr[pl.ds(interior - w - 1, 1), :] = zrow1
        z_scr[pl.ds(bot_off + w, 1), :] = zrow1

        # ---- 3x3 "same" conv as 9 shifted MXU dots (no im2col) --------------
        col = lax.broadcasted_iota(jnp.int32, (hw_t, 1), 0) % w
        not_left = col > 0
        not_right = col < (w - 1)

        acc = None
        k = 0
        for dy in (-1, 0, 1):
            for dx in (-1, 0, 1):
                sh = z_scr[pl.ds(interior + dy * w + dx, hw_t), :]
                if dx == -1:
                    sh = jnp.where(not_left, sh, jnp.zeros((), z_dtype))
                elif dx == 1:
                    sh = jnp.where(not_right, sh, jnp.zeros((), z_dtype))
                d = jnp.dot(sh, fw_ref[k], preferred_element_type=jnp.float32)
                acc = d if acc is None else acc + d
                k += 1
        out_ref[0] = (acc + fb_ref[...]).astype(out_ref.dtype)

    return kernel


def _run_level(x2d, carry2d, uw, p, h, w, cinp, cp, th, write_carry, compute_dtype):
    """One fused pallas_call for a pyramid level.  Returns (carry, fpn_out)."""
    n = x2d.shape[0]
    has_carry = carry2d is not None
    n_tiles = h // th
    has_halo = n_tiles > 1
    hw_t = th * w
    th_c = th // 2
    wc = w // 2
    hc = h // 2

    kernel = _make_level_kernel(th, w, wc, cp,
                                has_carry=has_carry, has_halo=has_halo,
                                write_carry=write_carry, z_dtype=compute_dtype)

    in_specs = [pl.BlockSpec((1, hw_t, cinp), lambda b, i: (b, i, 0))]
    inputs = [x2d]
    if has_halo:
        in_specs += [
            pl.BlockSpec((1, w, cinp),
                         lambda b, i: (b, jnp.maximum(i * th - 1, 0), 0)),
            pl.BlockSpec((1, w, cinp),
                         lambda b, i: (b, jnp.minimum((i + 1) * th, h - 1), 0)),
        ]
        inputs += [x2d, x2d]
    if has_carry:
        in_specs += [pl.BlockSpec((1, th_c * wc, cp), lambda b, i: (b, i, 0))]
        inputs += [carry2d]
        if has_halo:
            in_specs += [
                pl.BlockSpec((1, wc, cp),
                             lambda b, i: (b, jnp.maximum(i * th_c - 1, 0), 0)),
                pl.BlockSpec((1, wc, cp),
                             lambda b, i: (b, jnp.minimum((i + 1) * th_c, hc - 1), 0)),
            ]
            inputs += [carry2d, carry2d]
        in_specs += [pl.BlockSpec((w, wc), lambda b, i: (0, 0))]
        inputs += [uw]
    in_specs += [
        pl.BlockSpec((cinp, cp), lambda b, i: (0, 0)),      # lateral weight
        pl.BlockSpec((1, cp), lambda b, i: (0, 0)),          # lateral bias (f32)
        pl.BlockSpec((9, cp, cp), lambda b, i: (0, 0, 0)),   # 3x3 weight (9, Cin, Cout)
        pl.BlockSpec((1, cp), lambda b, i: (0, 0)),          # 3x3 bias (f32)
    ]
    inputs += [p["lw"], p["lb"], p["fw"], p["fb"]]

    out_shapes, out_specs = [], []
    if write_carry:
        out_shapes.append(jax.ShapeDtypeStruct((n, h * w, cp), compute_dtype))
        out_specs.append(pl.BlockSpec((1, hw_t, cp), lambda b, i: (b, i, 0)))
    out_shapes.append(jax.ShapeDtypeStruct((n, h * w, cp), jnp.float32))
    out_specs.append(pl.BlockSpec((1, hw_t, cp), lambda b, i: (b, i, 0)))

    z_rows = (th + 2) * w + 16
    scratch = [pltpu.VMEM((z_rows, cp), compute_dtype)]

    # ---- explicit VMEM budget (auto-pipelined blocks are double buffered) ----
    csize = jnp.dtype(compute_dtype).itemsize
    in_bytes = hw_t * cinp * csize
    if has_halo:
        in_bytes += 2 * w * cinp * csize
    if has_carry:
        in_bytes += th_c * wc * cp * csize + w * wc * csize
        if has_halo:
            in_bytes += 2 * wc * cp * csize
    in_bytes += (cinp * cp + 9 * cp * cp) * csize + 2 * cp * 4
    out_bytes = hw_t * cp * 4 + (hw_t * cp * csize if write_carry else 0)
    vmem_need = 2 * (in_bytes + out_bytes) + z_rows * cp * csize
    vmem_limit = int(min(max(vmem_need + (4 << 20), 32 << 20), 100 << 20))

    flops = 2 * n * h * w * cinp * cp + 18 * n * h * w * cp * cp
    if has_carry:
        flops += 2 * n * hc * w * wc * cp
    bytes_accessed = x2d.size * csize + n * h * w * cp * 4
    if has_carry:
        bytes_accessed += carry2d.size * csize
    if write_carry:
        bytes_accessed += n * h * w * cp * csize

    res = pl.pallas_call(
        kernel,
        out_shape=tuple(out_shapes),
        grid=(n, n_tiles),
        in_specs=in_specs,
        out_specs=tuple(out_specs),
        scratch_shapes=scratch,
        compiler_params=pltpu.CompilerParams(
            dimension_semantics=("parallel", "parallel"),
            vmem_limit_bytes=vmem_limit),
        cost_estimate=pl.CostEstimate(flops=int(flops), transcendentals=0,
                                      bytes_accessed=int(bytes_accessed)),
    )(*inputs)

    if write_carry:
        inner, out = res
    else:
        out = res[0] if isinstance(res, (tuple, list)) else res
        inner = None
    return inner, out


# --------------------------------- FPN ---------------------------------------

def fpn_forward(features_nchw, params, compute_dtype=jnp.bfloat16, tile_rows=256):
    """Pallas FPN forward.  `features_nchw`: list of NCHW arrays, coarsest last."""
    nlev = len(features_nchw)
    cout = params[0]["fb"].shape[0]
    cp = _round_up(cout, 128)          # lane-dense output channel width

    shapes, feats, cinps = [], [], []
    for f, p in zip(features_nchw, params):   # layout glue hoisted host-side
        n, c, h, w = f.shape
        cinp = _round_up(c, 128)
        shapes.append((n, h, w))
        cinps.append(cinp)
        x = jnp.transpose(f, (0, 2, 3, 1)).reshape(n, h * w, c).astype(compute_dtype)
        if cinp != c:
            x = jnp.pad(x, ((0, 0), (0, 0), (0, cinp - c)))
        feats.append(x)

    prepped = [_prep_level_params(p, cinp, cp, compute_dtype)
               for p, cinp in zip(params, cinps)]

    outs = [None] * nlev
    carry = None
    for i in range(nlev - 1, -1, -1):          # top-down: coarsest -> finest
        _, h, w = shapes[i]
        uw = None
        if carry is not None:
            _, hcoarse, wcoarse = shapes[i + 1]
            assert h == 2 * hcoarse and w == 2 * wcoarse, "FPN assumes an exact 2x pyramid"
            uw = _make_w_upsample_matrix(w).astype(compute_dtype)
        th = _pick_tile_rows(h, w, carry is not None, tile_rows)
        carry, outs[i] = _run_level(feats[i], carry, uw, prepped[i],
                                    h, w, cinps[i], cp, th,
                                    write_carry=(i > 0), compute_dtype=compute_dtype)

    results = []
    for (n, h, w), o in zip(shapes, outs):
        o = o[:, :, :cout].reshape(n, h, w, cout)       # drop channel padding
        results.append(jnp.transpose(o, (0, 3, 1, 2)))  # -> NCHW
    return results


# ----------------------- pure-JAX reference (for check) ----------------------

def fpn_reference(features_nchw, params):
    dn = ("NCHW", "OIHW", "NCHW")

    def conv1(x, p):
        w = jnp.transpose(p["lw"], (1, 0))[:, :, None, None]
        y = lax.conv_general_dilated(x, w, (1, 1), "VALID", dimension_numbers=dn)
        return y + p["lb"][None, :, None, None]

    def conv3(x, p):
        w = jnp.transpose(p["fw"], (3, 2, 0, 1))
        y = lax.conv_general_dilated(x, w, (1, 1), "SAME", dimension_numbers=dn)
        return y + p["fb"][None, :, None, None]

    laterals = [conv1(f, p) for f, p in zip(features_nchw, params)]
    outs = [None] * len(laterals)
    last = laterals[-1]
    outs[-1] = conv3(last, params[-1])
    for i in range(len(laterals) - 2, -1, -1):
        up = jnp.repeat(jnp.repeat(last, 2, axis=2), 2, axis=3)
        last = laterals[i] + up
        outs[i] = conv3(last, params[i])
    return outs


# --------------------------------- main ---------------------------------------

if __name__ == "__main__":
    in_channels_list = [4, 8, 16]
    out_channels = 8
    batch = 2
    spatials = [16, 8, 4]              # pyramid: finest first, coarsest last

    nkeys = 4 * len(in_channels_list) + len(in_channels_list)
    keys = jax.random.split(jax.random.PRNGKey(0), nkeys)

    params = []
    ki = 0
    for cin in in_channels_list:
        lw = jax.random.normal(keys[ki], (cin, out_channels), jnp.float32) * 0.1; ki += 1
        lb = jax.random.normal(keys[ki], (out_channels,), jnp.float32) * 0.1; ki += 1
        fw = jax.random.normal(keys[ki], (3, 3, out_channels, out_channels), jnp.float32) * 0.1; ki += 1
        fb = jax.random.normal(keys[ki], (out_channels,), jnp.float32) * 0.1; ki += 1
        params.append({"lw": lw, "lb": lb, "fw": fw, "fb": fb})

    features = [
        jax.random.normal(keys[ki + j], (batch, cin, s, s), jnp.float32)
        for j, (cin, s) in enumerate(zip(in_channels_list, spatials))
    ]

    refs = [jax.block_until_ready(r) for r in fpn_reference(features, params)]

    # Strict f32 check; tile_rows=8 makes the finest level run the halo'd H-tiling
    # path (2 tiles) while coarser levels run untiled.
    outs = fpn_forward(features, params, compute_dtype=jnp.float32, tile_rows=8)
    outs = [jax.block_until_ready(o) for o in outs]
    for o, r in zip(outs, refs):
        assert o.shape == r.shape, (o.shape, r.shape)
        np.testing.assert_allclose(np.asarray(o), np.asarray(r), rtol=1e-4, atol=1e-4)

    # Default bf16-fed MXU path (f32 accumulation): loose numerical sanity check.
    outs_bf16 = fpn_forward(features, params, tile_rows=8)
    outs_bf16 = [jax.block_until_ready(o) for o in outs_bf16]
    for o, r in zip(outs_bf16, refs):
        rn = np.asarray(r)
        rel = np.linalg.norm(np.asarray(o) - rn) / np.linalg.norm(rn)
        assert rel < 3e-2, rel

    print("KERNEL_OK")
</pallas_src>

<mosaic_0001>
module attributes {stable_mosaic.version = 11 : i64} {
  func.func @kernel(%arg0: i32, %arg1: i32, %arg2: memref<1x16x128xf32, #tpu.memory_space<vmem>>, %arg3: memref<128x128xf32, #tpu.memory_space<vmem>>, %arg4: memref<1x128xf32, #tpu.memory_space<vmem>>, %arg5: memref<9x128x128xf32, #tpu.memory_space<vmem>>, %arg6: memref<1x128xf32, #tpu.memory_space<vmem>>, %arg7: memref<1x16x128xf32, #tpu.memory_space<vmem>>, %arg8: memref<1x16x128xf32, #tpu.memory_space<vmem>>, %arg9: memref<40x128xf32, #tpu.memory_space<vmem>>) attributes {dimension_semantics = [#tpu.dimension_semantics<parallel>, #tpu.dimension_semantics<parallel>], iteration_bounds = array<i64: 2, 1>, scalar_prefetch = 0 : i64, scratch_operands = 1 : i64, tpu.core_type = #tpu.core_type<tc>, window_params = [{transform_indices = @transform_0, window_bounds = array<i64: 1, 16, 128>}, {pipeline_mode = #tpu.pipeline_mode<synchronous>, transform_indices = @transform_1, window_bounds = array<i64: 128, 128>}, {pipeline_mode = #tpu.pipeline_mode<synchronous>, transform_indices = @transform_2, window_bounds = array<i64: 1, 128>}, {pipeline_mode = #tpu.pipeline_mode<synchronous>, transform_indices = @transform_3, window_bounds = array<i64: 9, 128, 128>}, {pipeline_mode = #tpu.pipeline_mode<synchronous>, transform_indices = @transform_4, window_bounds = array<i64: 1, 128>}, {transform_indices = @transform_5, window_bounds = array<i64: 1, 16, 128>}, {transform_indices = @transform_6, window_bounds = array<i64: 1, 16, 128>}]} {
    %c0 = arith.constant 0 : index
    %c0_0 = arith.constant 0 : index
    %0 = vector.load %arg3[%c0, %c0_0] : memref<128x128xf32, #tpu.memory_space<vmem>>, vector<128x128xf32>
    %c0_1 = arith.constant 0 : index
    %c0_2 = arith.constant 0 : index
    %1 = vector.load %arg4[%c0_1, %c0_2] : memref<1x128xf32, #tpu.memory_space<vmem>>, vector<1x128xf32>
    %c0_3 = arith.constant 0 : index
    %c0_4 = arith.constant 0 : index
    %c0_5 = arith.constant 0 : index
    %2 = vector.load %arg2[%c0_3, %c0_4, %c0_5] : memref<1x16x128xf32, #tpu.memory_space<vmem>>, vector<1x16x128xf32>
    %3 = vector.shape_cast %2 : vector<1x16x128xf32> to vector<16x128xf32>
    %cst = arith.constant dense<0.000000e+00> : vector<16x128xf32>
    %4 = tpu.matmul %3, %0, %cst {dimension_numbers = #tpu.dot_dimension_numbers<[1], [0], [0], [1], [0, 0, 1, 1], [], []>} : vector<16x128xf32>, vector<128x128xf32>, vector<16x128xf32> -> vector<16x128xf32>
    %5 = vector.broadcast %1 : vector<1x128xf32> to vector<16x128xf32>
    %6 = arith.addf %4, %5 : vector<16x128xf32>
    %c12 = arith.constant 12 : index
    %c0_6 = arith.constant 0 : index
    %7 = vector.load %arg9[%c12, %c0_6] : memref<40x128xf32, #tpu.memory_space<vmem>>, vector<16x128xf32>
    tpu.vector_store %arg9[%c12, %c0_6], %6 {strides = array<i32>} : memref<40x128xf32, #tpu.memory_space<vmem>>, vector<16x128xf32>,
    %c12_7 = arith.constant 12 : index
    %c0_8 = arith.constant 0 : index
    %8 = vector.load %arg9[%c12_7, %c0_8] : memref<40x128xf32, #tpu.memory_space<vmem>>, vector<16x128xf32>
    %c0_9 = arith.constant 0 : index
    %c0_10 = arith.constant 0 : index
    %c0_11 = arith.constant 0 : index
    %9 = vector.load %arg7[%c0_9, %c0_10, %c0_11] : memref<1x16x128xf32, #tpu.memory_space<vmem>>, vector<1x16x128xf32>
    %10 = vector.shape_cast %9 : vector<1x16x128xf32> to vector<16x128xf32>
    %11 = vector.shape_cast %8 : vector<16x128xf32> to vector<1x16x128xf32>
    tpu.vector_store %arg7[%c0_9, %c0_10, %c0_11], %11 {strides = array<i32>} : memref<1x16x128xf32, #tpu.memory_space<vmem>>, vector<1x16x128xf32>,
    %cst_12 = arith.constant 0.000000e+00 : f32
    %12 = vector.broadcast %cst_12 : f32 to vector<4x128xf32>
    %c8 = arith.constant 8 : index
    %c0_13 = arith.constant 0 : index
    %13 = vector.load %arg9[%c8, %c0_13] : memref<40x128xf32, #tpu.memory_space<vmem>>, vector<4x128xf32>
    tpu.vector_store %arg9[%c8, %c0_13], %12 {strides = array<i32>} : memref<40x128xf32, #tpu.memory_space<vmem>>, vector<4x128xf32>,
    %c28 = arith.constant 28 : index
    %c0_14 = arith.constant 0 : index
    %14 = vector.load %arg9[%c28, %c0_14] : memref<40x128xf32, #tpu.memory_space<vmem>>, vector<4x128xf32>
    tpu.vector_store %arg9[%c28, %c0_14], %12 {strides = array<i32>} : memref<40x128xf32, #tpu.memory_space<vmem>>, vector<4x128xf32>,
    %cst_15 = arith.constant 0.000000e+00 : f32
    %15 = vector.broadcast %cst_15 : f32 to vector<1x128xf32>
    %c7 = arith.constant 7 : index
    %c0_16 = arith.constant 0 : index
    %16 = vector.load %arg9[%c7, %c0_16] : memref<40x128xf32, #tpu.memory_space<vmem>>, vector<1x128xf32>
    tpu.vector_store %arg9[%c7, %c0_16], %15 {strides = array<i32>} : memref<40x128xf32, #tpu.memory_space<vmem>>, vector<1x128xf32>,
    %c32 = arith.constant 32 : index
    %c0_17 = arith.constant 0 : index
    %17 = vector.load %arg9[%c32, %c0_17] : memref<40x128xf32, #tpu.memory_space<vmem>>, vector<1x128xf32>
    tpu.vector_store %arg9[%c32, %c0_17], %15 {strides = array<i32>} : memref<40x128xf32, #tpu.memory_space<vmem>>, vector<1x128xf32>,
    %18 = tpu.iota {dimensions = array<i32: 0>} : vector<16x1xi32>
    %c4_i32 = arith.constant 4 : i32
    %c0_i32 = arith.constant 0 : i32
    %19 = arith.cmpi eq, %c4_i32, %c0_i32 : i32
    %c1_i32 = arith.constant 1 : i32
    %20 = arith.select %19, %c1_i32, %c4_i32 : i32
    %21 = vector.broadcast %20 : i32 to vector<16x1xi32>
    %22 = arith.remsi %18, %21 : vector<16x1xi32>
    %c0_i32_18 = arith.constant 0 : i32
    %23 = vector.broadcast %c0_i32_18 : i32 to vector<16x1xi32>
    %24 = arith.cmpi ne, %22, %23 : vector<16x1xi32>
    %c0_i32_19 = arith.constant 0 : i32
    %25 = vector.broadcast %c0_i32_19 : i32 to vector<16x1xi32>
    %26 = arith.cmpi slt, %22, %25 : vector<16x1xi32>
    %c0_i32_20 = arith.constant 0 : i32
    %27 = arith.cmpi slt, %20, %c0_i32_20 : i32
    %28 = vector.broadcast %27 : i1 to vector<16x1xi1>
    %29 = vector.broadcast %28 : vector<16x1xi1> to vector<16x1xi1>
    %30 = arith.xori %26, %29 : vector<16x1xi1>
    %31 = arith.andi %30, %24 : vector<16x1xi1>
    %32 = vector.broadcast %20 : i32 to vector<16x1xi32>
    %33 = arith.addi %22, %32 : vector<16x1xi32>
    %34 = arith.select %31, %33, %22 : vector<16x1xi1>, vector<16x1xi32>
    %c0_i32_21 = arith.constant 0 : i32
    %35 = vector.broadcast %c0_i32_21 : i32 to vector<16x1xi32>
    %36 = arith.cmpi sgt, %34, %35 : vector<16x1xi32>
    %c3_i32 = arith.constant 3 : i32
    %37 = vector.broadcast %c3_i32 : i32 to vector<16x1xi32>
    %38 = arith.cmpi slt, %34, %37 : vector<16x1xi32>
    %c7_22 = arith.constant 7 : index
    %c0_23 = arith.constant 0 : index
    %39 = vector.load %arg9[%c7_22, %c0_23] : memref<40x128xf32, #tpu.memory_space<vmem>>, vector<16x128xf32>
    %cst_24 = arith.constant 0.000000e+00 : f32
    %40 = vector.shape_cast %36 : vector<16x1xi1> to vector<16x1xi1>
    %41 = vector.broadcast %40 : vector<16x1xi1> to vector<16x128xi1>
    %42 = vector.broadcast %cst_24 : f32 to vector<16x128xf32>
    %43 = arith.select %41, %39, %42 : vector<16x128xi1>, vector<16x128xf32>
    %c0_25 = arith.constant 0 : index
    %c0_26 = arith.constant 0 : index
    %c0_27 = arith.constant 0 : index
    %44 = vector.load %arg5[%c0_25, %c0_26, %c0_27] : memref<9x128x128xf32, #tpu.memory_space<vmem>>, vector<1x128x128xf32>
    %45 = vector.shape_cast %44 : vector<1x128x128xf32> to vector<128x128xf32>
    %cst_28 = arith.constant dense<0.000000e+00> : vector<16x128xf32>
    %46 = tpu.matmul %43, %45, %cst_28 {dimension_numbers = #tpu.dot_dimension_numbers<[1], [0], [0], [1], [0, 0, 1, 1], [], []>} : vector<16x128xf32>, vector<128x128xf32>, vector<16x128xf32> -> vector<16x128xf32>
    %c8_29 = arith.constant 8 : index
    %c0_30 = arith.constant 0 : index
    %47 = vector.load %arg9[%c8_29, %c0_30] : memref<40x128xf32, #tpu.memory_space<vmem>>, vector<16x128xf32>
    %c1 = arith.constant 1 : index
    %c0_31 = arith.constant 0 : index
    %c0_32 = arith.constant 0 : index
    %48 = vector.load %arg5[%c1, %c0_31, %c0_32] : memref<9x128x128xf32, #tpu.memory_space<vmem>>, vector<1x128x128xf32>
    %49 = vector.shape_cast %48 : vector<1x128x128xf32> to vector<128x128xf32>
    %cst_33 = arith.constant dense<0.000000e+00> : vector<16x128xf32>
    %50 = tpu.matmul %47, %49, %cst_33 {dimension_numbers = #tpu.dot_dimension_numbers<[1], [0], [0], [1], [0, 0, 1, 1], [], []>} : vector<16x128xf32>, vector<128x128xf32>, vector<16x128xf32> -> vector<16x128xf32>
    %51 = arith.addf %46, %50 : vector<16x128xf32>
    %c9 = arith.constant 9 : index
    %c0_34 = arith.constant 0 : index
    %52 = vector.load %arg9[%c9, %c0_34] : memref<40x128xf32, #tpu.memory_space<vmem>>, vector<16x128xf32>
    %cst_35 = arith.constant 0.000000e+00 : f32
    %53 = vector.shape_cast %38 : vector<16x1xi1> to vector<16x1xi1>
    %54 = vector.broadcast %53 : vector<16x1xi1> to vector<16x128xi1>
    %55 = vector.broadcast %cst_35 : f32 to vector<16x128xf32>
    %56 = arith.select %54, %52, %55 : vector<16x128xi1>, vector<16x128xf32>
    %c2 = arith.constant 2 : index
    %c0_36 = arith.constant 0 : index
    %c0_37 = arith.constant 0 : index
    %57 = vector.load %arg5[%c2, %c0_36, %c0_37] : memref<9x128x128xf32, #tpu.memory_space<vmem>>, vector<1x128x128xf32>
    %58 = vector.shape_cast %57 : vector<1x128x128xf32> to vector<128x128xf32>
    %cst_38 = arith.constant dense<0.000000e+00> : vector<16x128xf32>
    %59 = tpu.matmul %56, %58, %cst_38 {dimension_numbers = #tpu.dot_dimension_numbers<[1], [0], [0], [1], [0, 0, 1, 1], [], []>} : vector<16x128xf32>, vector<128x128xf32>, vector<16x128xf32> -> vector<16x128xf32>
    %60 = arith.addf %51, %59 : vector<16x128xf32>
    %c11 = arith.constant 11 : index
    %c0_39 = arith.constant 0 : index
    %61 = vector.load %arg9[%c11, %c0_39] : memref<40x128xf32, #tpu.memory_space<vmem>>, vector<16x128xf32>
    %cst_40 = arith.constant 0.000000e+00 : f32
    %62 = vector.shape_cast %36 : vector<16x1xi1> to vector<16x1xi1>
    %63 = vector.broadcast %62 : vector<16x1xi1> to vector<16x128xi1>
    %64 = vector.broadcast %cst_40 : f32 to vector<16x128xf32>
    %65 = arith.select %63, %61, %64 : vector<16x128xi1>, vector<16x128xf32>
    %c3 = arith.constant 3 : index
    %c0_41 = arith.constant 0 : index
    %c0_42 = arith.constant 0 : index
    %66 = vector.load %arg5[%c3, %c0_41, %c0_42] : memref<9x128x128xf32, #tpu.memory_space<vmem>>, vector<1x128x128xf32>
    %67 = vector.shape_cast %66 : vector<1x128x128xf32> to vector<128x128xf32>
    %cst_43 = arith.constant dense<0.000000e+00> : vector<16x128xf32>
    %68 = tpu.matmul %65, %67, %cst_43 {dimension_numbers = #tpu.dot_dimension_numbers<[1], [0], [0], [1], [0, 0, 1, 1], [], []>} : vector<16x128xf32>, vector<128x128xf32>, vector<16x128xf32> -> vector<16x128xf32>
    %69 = arith.addf %60, %68 : vector<16x128xf32>
    %c12_44 = arith.constant 12 : index
    %c0_45 = arith.constant 0 : index
    %70 = vector.load %arg9[%c12_44, %c0_45] : memref<40x128xf32, #tpu.memory_space<vmem>>, vector<16x128xf32>
    %c4 = arith.constant 4 : index
    %c0_46 = arith.constant 0 : index
    %c0_47 = arith.constant 0 : index
    %71 = vector.load %arg5[%c4, %c0_46, %c0_47] : memref<9x128x128xf32, #tpu.memory_space<vmem>>, vector<1x128x128xf32>
    %72 = vector.shape_cast %71 : vector<1x128x128xf32> to vector<128x128xf32>
    %cst_48 = arith.constant dense<0.000000e+00> : vector<16x128xf32>
    %73 = tpu.matmul %70, %72, %cst_48 {dimension_numbers = #tpu.dot_dimension_numbers<[1], [0], [0], [1], [0, 0, 1, 1], [], []>} : vector<16x128xf32>, vector<128x128xf32>, vector<16x128xf32> -> vector<16x128xf32>
    %74 = arith.addf %69, %73 : vector<16x128xf32>
    %c13 = arith.constant 13 : index
    %c0_49 = arith.constant 0 : index
    %75 = vector.load %arg9[%c13, %c0_49] : memref<40x128xf32, #tpu.memory_space<vmem>>, vector<16x128xf32>
    %cst_50 = arith.constant 0.000000e+00 : f32
    %76 = vector.shape_cast %38 : vector<16x1xi1> to vector<16x1xi1>
    %77 = vector.broadcast %76 : vector<16x1xi1> to vector<16x128xi1>
    %78 = vector.broadcast %cst_50 : f32 to vector<16x128xf32>
    %79 = arith.select %77, %75, %78 : vector<16x128xi1>, vector<16x128xf32>
    %c5 = arith.constant 5 : index
    %c0_51 = arith.constant 0 : index
    %c0_52 = arith.constant 0 : index
    %80 = vector.load %arg5[%c5, %c0_51, %c0_52] : memref<9x128x128xf32, #tpu.memory_space<vmem>>, vector<1x128x128xf32>
    %81 = vector.shape_cast %80 : vector<1x128x128xf32> to vector<128x128xf32>
    %cst_53 = arith.constant dense<0.000000e+00> : vector<16x128xf32>
    %82 = tpu.matmul %79, %81, %cst_53 {dimension_numbers = #tpu.dot_dimension_numbers<[1], [0], [0], [1], [0, 0, 1, 1], [], []>} : vector<16x128xf32>, vector<128x128xf32>, vector<16x128xf32> -> vector<16x128xf32>
    %83 = arith.addf %74, %82 : vector<16x128xf32>
    %c15 = arith.constant 15 : index
    %c0_54 = arith.constant 0 : index
    %84 = vector.load %arg9[%c15, %c0_54] : memref<40x128xf32, #tpu.memory_space<vmem>>, vector<16x128xf32>
    %cst_55 = arith.constant 0.000000e+00 : f32
    %85 = vector.shape_cast %36 : vector<16x1xi1> to vector<16x1xi1>
    %86 = vector.broadcast %85 : vector<16x1xi1> to vector<16x128xi1>
    %87 = vector.broadcast %cst_55 : f32 to vector<16x128xf32>
    %88 = arith.select %86, %84, %87 : vector<16x128xi1>, vector<16x128xf32>
    %c6 = arith.constant 6 : index
    %c0_56 = arith.constant 0 : index
    %c0_57 = arith.constant 0 : index
    %89 = vector.load %arg5[%c6, %c0_56, %c0_57] : memref<9x128x128xf32, #tpu.memory_space<vmem>>, vector<1x128x128xf32>
    %90 = vector.shape_cast %89 : vector<1x128x128xf32> to vector<128x128xf32>
    %cst_58 = arith.constant dense<0.000000e+00> : vector<16x128xf32>
    %91 = tpu.matmul %88, %90, %cst_58 {dimension_numbers = #tpu.dot_dimension_numbers<[1], [0], [0], [1], [0, 0, 1, 1], [], []>} : vector<16x128xf32>, vector<128x128xf32>, vector<16x128xf32> -> vector<16x128xf32>
    %92 = arith.addf %83, %91 : vector<16x128xf32>
    %c16 = arith.constant 16 : index
    %c0_59 = arith.constant 0 : index
    %93 = vector.load %arg9[%c16, %c0_59] : memref<40x128xf32, #tpu.memory_space<vmem>>, vector<16x128xf32>
    %c7_60 = arith.constant 7 : index
    %c0_61 = arith.constant 0 : index
    %c0_62 = arith.constant 0 : index
    %94 = vector.load %arg5[%c7_60, %c0_61, %c0_62] : memref<9x128x128xf32, #tpu.memory_space<vmem>>, vector<1x128x128xf32>
    %95 = vector.shape_cast %94 : vector<1x128x128xf32> to vector<128x128xf32>
    %cst_63 = arith.constant dense<0.000000e+00> : vector<16x128xf32>
    %96 = tpu.matmul %93, %95, %cst_63 {dimension_numbers = #tpu.dot_dimension_numbers<[1], [0], [0], [1], [0, 0, 1, 1], [], []>} : vector<16x128xf32>, vector<128x128xf32>, vector<16x128xf32> -> vector<16x128xf32>
    %97 = arith.addf %92, %96 : vector<16x128xf32>
    %c17 = arith.constant 17 : index
    %c0_64 = arith.constant 0 : index
    %98 = vector.load %arg9[%c17, %c0_64] : memref<40x128xf32, #tpu.memory_space<vmem>>, vector<16x128xf32>
    %cst_65 = arith.constant 0.000000e+00 : f32
    %99 = vector.shape_cast %38 : vector<16x1xi1> to vector<16x1xi1>
    %100 = vector.broadcast %99 : vector<16x1xi1> to vector<16x128xi1>
    %101 = vector.broadcast %cst_65 : f32 to vector<16x128xf32>
    %102 = arith.select %100, %98, %101 : vector<16x128xi1>, vector<16x128xf32>
    %c8_66 = arith.constant 8 : index
    %c0_67 = arith.constant 0 : index
    %c0_68 = arith.constant 0 : index
    %103 = vector.load %arg5[%c8_66, %c0_67, %c0_68] : memref<9x128x128xf32, #tpu.memory_space<vmem>>, vector<1x128x128xf32>
    %104 = vector.shape_cast %103 : vector<1x128x128xf32> to vector<128x128xf32>
    %cst_69 = arith.constant dense<0.000000e+00> : vector<16x128xf32>
    %105 = tpu.matmul %102, %104, %cst_69 {dimension_numbers = #tpu.dot_dimension_numbers<[1], [0], [0], [1], [0, 0, 1, 1], [], []>} : vector<16x128xf32>, vector<128x128xf32>, vector<16x128xf32> -> vector<16x128xf32>
    %106 = arith.addf %97, %105 : vector<16x128xf32>
    %c0_70 = arith.constant 0 : index
    %c0_71 = arith.constant 0 : index
    %107 = vector.load %arg6[%c0_70, %c0_71] : memref<1x128xf32, #tpu.memory_space<vmem>>, vector<1x128xf32>
    %108 = vector.broadcast %107 : vector<1x128xf32> to vector<16x128xf32>
    %109 = arith.addf %106, %108 : vector<16x128xf32>
    %c0_72 = arith.constant 0 : index
    %c0_73 = arith.constant 0 : index
    %c0_74 = arith.constant 0 : index
    %110 = vector.load %arg8[%c0_72, %c0_73, %c0_74] : memref<1x16x128xf32, #tpu.memory_space<vmem>>, vector<1x16x128xf32>
    %111 = vector.shape_cast %110 : vector<1x16x128xf32> to vector<16x128xf32>
    %112 = vector.shape_cast %109 : vector<16x128xf32> to vector<1x16x128xf32>
    tpu.vector_store %arg8[%c0_72, %c0_73, %c0_74], %112 {strides = array<i32>} : memref<1x16x128xf32, #tpu.memory_space<vmem>>, vector<1x16x128xf32>,
    return
  }
  func.func @transform_0(%arg0: i32, %arg1: i32) -> (i32, i32, i32) {
    %c0_i32 = arith.constant 0 : i32
    %c0_i32_0 = arith.constant 0 : i32
    return %arg0, %arg1, %c0_i32 : i32, i32, i32
  }
  func.func @transform_1(%arg0: i32, %arg1: i32) -> (i32, i32) {
    %c0_i32 = arith.constant 0 : i32
    %c0_i32_0 = arith.constant 0 : i32
    %c0_i32_1 = arith.constant 0 : i32
    return %c0_i32, %c0_i32_0 : i32, i32
  }
  func.func @transform_2(%arg0: i32, %arg1: i32) -> (i32, i32) {
    %c0_i32 = arith.constant 0 : i32
    %c0_i32_0 = arith.constant 0 : i32
    %c0_i32_1 = arith.constant 0 : i32
    return %c0_i32, %c0_i32_0 : i32, i32
  }
  func.func @transform_3(%arg0: i32, %arg1: i32) -> (i32, i32, i32) {
    %c0_i32 = arith.constant 0 : i32
    %c0_i32_0 = arith.constant 0 : i32
    %c0_i32_1 = arith.constant 0 : i32
    %c0_i32_2 = arith.constant 0 : i32
    return %c0_i32, %c0_i32_0, %c0_i32_1 : i32, i32, i32
  }
  func.func @transform_4(%arg0: i32, %arg1: i32) -> (i32, i32) {
    %c0_i32 = arith.constant 0 : i32
    %c0_i32_0 = arith.constant 0 : i32
    %c0_i32_1 = arith.constant 0 : i32
    return %c0_i32, %c0_i32_0 : i32, i32
  }
  func.func @transform_5(%arg0: i32, %arg1: i32) -> (i32, i32, i32) {
    %c0_i32 = arith.constant 0 : i32
    %c0_i32_0 = arith.constant 0 : i32
    return %arg0, %arg1, %c0_i32 : i32, i32, i32
  }
  func.func @transform_6(%arg0: i32, %arg1: i32) -> (i32, i32, i32) {
    %c0_i32 = arith.constant 0 : i32
    %c0_i32_0 = arith.constant 0 : i32
    return %arg0, %arg1, %c0_i32 : i32, i32, i32
  }
}

</mosaic_0001>

<bundles_post_ra>
// kernel: tpu_custom_call.1
= control target key start
LH: loop header
LB: loop body
LE: loop exit
PB: predicated region body
PF: predicated region fallthrough
CT: control target
= control target key end

     0   :  { %12 = vsyncpa [#allocation4], 0  ;;  %s3171_s0 = inlined_call_operand.hbm [shape: f32[2,16,128], index: 0, kind: input, shape index: {}]   ;;  %s3172_s1 = inlined_call_operand.hbm [shape: f32[128,128], index: 1, kind: input, shape index: {}]   ;;  %s3173_s2 = inlined_call_operand.vmem [shape: f32[1,128], index: 2, kind: input, shape index: {}]   ;;  %s3174_s3 = inlined_call_operand.hbm [shape: f32[9,128,128], index: 3, kind: input, shape index: {}]   ;;  %s3175_s4 = inlined_call_operand.vmem [shape: f32[1,128], index: 4, kind: input, shape index: {}]   ;;  %s3176_s5 = inlined_call_operand.hbm [shape: f32[2,16,128], index: 5, kind: output, shape index: {0}]   ;;  %s3177_s6 = inlined_call_operand.hbm [shape: f32[2,16,128], index: 6, kind: output, shape index: {1}]  }
   0x1   :  { %14 = vsyncpa [#allocation4 + $0x1], 0 }
   0x2   :  { %15 = vsyncpa [#allocation7], 0 }
   0x3   :  { %16 = vsyncpa [#allocation5], 0 }
   0x4   :  { %18 = vsyncpa [#allocation5 + $0x1], 0 }
   0x5   :  { %19 = vsyncpa [#allocation11], 0 }
   0x6   :  { %21 = vsyncpa [#allocation11 + $0x1], 0  ;;  %s2794_s21 = smov 0   ;;  %s2796_s22 = smov 0  }
   0x7   :  { %s2798_s23 = smov 0   ;;  %s2800_s24 = smov 0  }
   0x8   :  { %s2802_s25 = smov 0   ;;  %s2804_s26 = smov 0  }
   0x9 LB: > { %s1544_s27 = sadd.s32 4294967295, %s2747_s26   ;;  %s1545_s28 = sadd.s32 4294967294, %s2747_s26   ;;  %s2747_s26 = sphi %s2804_s26, %s27_s26   ;;  %s2743_s25 = sphi %s2802_s25, %s3212_s25   ;;  %s2739_s24 = sphi %s2800_s24, %s3211_s24   ;;  %s2735_s23 = sphi %s2798_s23, %s3210_s23   ;;  %s2731_s22 = sphi %s2796_s22, %s3209_s22   ;;  %s2727_s21 = sphi %s2794_s21, %s3208_s21  }
   0xa   : > { %p61_p0 = scmp.ne.s32.totalorder %s2731_s22, %s2727_s21  ;;  %p2828_p1 = scmp.eq.s32.totalorder %s1544_s27, 0 }
   0xb   : > { %p2832_p2 = scmp.eq.s32.totalorder %s1544_s27, 1  ;;  %p177_p3 = scmp.eq.s32.totalorder %s1545_s28, 1 }
   0xc   : > { %s3184_s29 = scalar_select %p2828_p1, 1, 0 }
   0xd   : > { %p2838_p4 = por %p2828_p1, %p61_p0  ;;  %p1546_p5 = scmp.ge.s32.totalorder %s2747_s26, 1 }
   0xe   : > { %p2843_p6 = por %p177_p3, %p61_p0  ;;  %p212_p7 = scmp.lt.s32.totalorder %s2747_s26, 3 }
   0xf   : > { %s3186_s7 = scalar_select %p2838_p4, 1, 0 }
  0x10   : > { %s3187_s8 = scalar_select %p2843_p6, 1, 0 }
  0x11   : > { %p2848_p8 = pnand %p1546_p5, %p212_p7  ;;  %s2749_s10 = smov [#allocation6]  }
  0x12   : > { %3188 = sst [smem:[#allocation16_spill]] %s3187_s8  ;;  %s224_s11 = sshll.u32 %s2749_s10, 4  ;;  %s2852_s11 = int_to_ptr.vmem [resolvable:$true] %s224_s11 }
  0x13   : > { %p2464_p9 = pneg %p2848_p8  ;;  %s2750_s13 = smov [#allocation8]  }
  0x14   : > { %s240_s14 = sshll.u32 %s2750_s13, 4  ;;  %s2543_s17 = scalar_lea.hbm %s3172_s1, 2048  ;;  %s2863_s14 = int_to_ptr.vmem [resolvable:$true] %s240_s14 }
  0x15   : > { %p2859_p11 = pnand %p2464_p9, %p2828_p1  ;;  %p2544_p12 = scmp.ne.s32.totalorder %s3172_s1, %s2543_s17 }
  0x16   : > { %p2550_p5 = scmp.lt.u32.totalorder %s2543_s17, %s3172_s1 }
  0x17   : > { %p2545_p13 = pneg %p2859_p11 }
  0x19   : > { %p2546_p0 = pnand %p2545_p13, %p2544_p12 }
  0x1b   : > { %p2547_p3 = pneg %p2546_p0 }
  0x1d   : > { %p2552_p7 = pnand %p2550_p5, %p2547_p3 }
  0x1f   : > { %2555 = shalt.err (!%p2552_p7)
}
  0x20   : > { %s2556_s28 = scalar_lea.vmem %s2852_s11, 2048  ;;  %p2564_p1 = scmp.lt.s32.totalorder %s2852_s11, %s2852_s11 }
  0x21   : > { %p2557_p9 = scmp.ne.s32.totalorder %s2852_s11, %s2556_s28  ;;  %p2565_p12 = scmp.lt.s32.totalorder %s2556_s28, %s2556_s28 }
  0x23   : > { %p2559_p10 = pnand %p2557_p9, %p2545_p13  ;;  %p2566_p0 = por %p2565_p12, %p2564_p1 }
  0x25   : > { %p2560_p6 = pneg %p2559_p10 }
  0x27   : > { %p2567_p4 = pnand %p2566_p0, %p2560_p6 }
  0x29   : > { %2570 = shalt.err (!%p2567_p4)
}
  0x2a   : > { %s3182_s10 = smov 128   ;;  %s2752_s13 = smov 8  }
  0x2b   : > { %2467 = dma.hbm_to_vmem [thread:$0]  (!%p2859_p11), %s3172_s1, 2048, %s2852_s11, [#allocation7], %s3182_s10, %s3182_s10, %s2752_s13  }
  0x2c   : > { %s2571_s19 = scalar_lea.hbm %s3174_s3, 18432 }
  0x2d   : > { %p2572_p1 = scmp.ne.s32.totalorder %s3174_s3, %s2571_s19  ;;  %p2578_p10 = scmp.lt.u32.totalorder %s2571_s19, %s3174_s3 }
  0x2f   : > { %p2574_p4 = pnand %p2572_p1, %p2545_p13 }
  0x31   : > { %p2575_p6 = pneg %p2574_p4 }
  0x33   : > { %p2580_p3 = pnand %p2578_p10, %p2575_p6 }
  0x35   : > { %2583 = shalt.err (!%p2580_p3)
}
  0x36   : > { %s2584_s11 = scalar_lea.vmem %s2863_s14, 18432  ;;  %p2592_p12 = scmp.lt.s32.totalorder %s2863_s14, %s2863_s14 }
  0x37   : > { %p2585_p5 = scmp.ne.s32.totalorder %s2863_s14, %s2584_s11  ;;  %p2593_p0 = scmp.lt.s32.totalorder %s2584_s11, %s2584_s11 }
  0x39   : > { %p2587_p7 = pnand %p2585_p5, %p2545_p13  ;;  %p2594_p1 = por %p2593_p0, %p2592_p12 }
  0x3b   : > { %p2588_p9 = pneg %p2587_p7 }
  0x3d   : > { %p2595_p4 = pnand %p2594_p1, %p2588_p9 }
  0x3f   : > { %2598 = shalt.err (!%p2595_p4)
}
  0x40   : > { %2470 = dma.hbm_to_vmem [thread:$0]  (!%p2859_p11), %s3174_s3, 18432, %s2863_s14, [#allocation7], %s3182_s10, %s3182_s10, %s2752_s13  }
  0x41   : > { %s39_s12 = sadd.s32 1, %s2743_s25  ;;  %s48_s16 = sadd.s32 1, %s2735_s23 }
  0x42   : > { %p41_p13 = scmp.ge.s32.totalorder %s39_s12, 2  ;;  %p55_p6 = scmp.ne.s32.totalorder %s2735_s23, %s2731_s22 }
  0x43   : > { %p56_p10 = scmp.eq.s32.totalorder %s2747_s26, 0  ;;  %p2484_p3 = scmp.lt.s32.totalorder %s2747_s26, 2 }
  0x44   : > { %s3214_s12 = smov (%p41_p13, %s39_s12), 0  ;;  %p2933_p7 = por %p2832_p2, %p55_p6 }
  0x45   : > { %p57_p5 = por %p56_p10, %p55_p6  ;;  %s43_s18 = ssub.s32 %s2743_s25, %s3214_s12 }
  0x46   : > { %s3191_s17 = scalar_select %p2933_p7, 1, 0 }
  0x47   : > { %s257_s19 = sand.u32 1, %s2735_s23   ;;  %p46_p9 = scmp.eq.s32.totalorder %s43_s18, 0 }
  0x48   : > { %s1550_s14 = sshll.u32 %s257_s19, 4  ;;  %s1581_s20 = sshll.u32 %s2743_s25, 8 }
  0x49   : > { %s2942_s27 = scalar_select %p46_p9, %s2735_s23, %s48_s16  }
  0x4a   : > { %s2947_s8 = scalar_lea.hbm %s3171_s0, %s1581_s20  ;;  %s261_s30 = scalar_lea.vmem [#allocation3], %s1550_s14 }
  0x4b   : > { %s270_s15 = sshll.u32 %s261_s30, 4  ;;  %p2951_p2 = pnand %p2484_p3, %p57_p5  ;;  %s2955_s15 = int_to_ptr.vmem [resolvable:$true] %s270_s15 }
  0x4c   : > { %s2957_s16 = scalar_lea.sflag [#allocation4], %s257_s19  ;;  %s2599_s18 = scalar_lea.hbm %s2947_s8, 256 }
  0x4d   : > { %p2600_p11 = scmp.ne.s32.totalorder %s2947_s8, %s2599_s18  ;;  %p2601_p12 = pneg %p2951_p2 }
  0x4e   : > { %s2604_s28 = scalar_lea.hbm %s3171_s0, 512  ;;  %p2605_p4 = scmp.lt.u32.totalorder %s2947_s8, %s3171_s0 }
  0x4f   : > { %p2602_p0 = pnand %p2601_p12, %p2600_p11  ;;  %p2606_p13 = scmp.lt.u32.totalorder %s2604_s28, %s2599_s18 }
  0x50   : > { %p2608_p10 = scmp.lt.u32.totalorder %s2599_s18, %s2947_s8 }
  0x51   : > { %p2603_p1 = pneg %p2602_p0  ;;  %p2607_p6 = por %p2606_p13, %p2605_p4 }
  0x53   : > { %p2609_p3 = por %p2608_p10, %p2607_p6 }
  0x55   : > { %p2610_p5 = pnand %p2609_p3, %p2603_p1 }
  0x57   : > { %2613 = shalt.err (!%p2610_p5)
}
  0x58   : > { %s2614_s19 = scalar_lea.vmem %s2955_s15, 256  ;;  %s2753_s14 = smov [#allocation3]  }
  0x59   : > { %p2615_p9 = scmp.ne.s32.totalorder %s2955_s15, %s2614_s19  ;;  %s2619_s20 = sshll.u32 %s2753_s14, 4  ;;  %s2620_s20 = int_to_ptr.vmem [resolvable:$false] %s2619_s20 }
  0x5a   : > { %s2621_s11 = scalar_lea.vmem %s2620_s20, 512  ;;  %p2622_p7 = scmp.lt.s32.totalorder %s2955_s15, %s2620_s20 }
  0x5b   : > { %p2617_p11 = pnand %p2615_p9, %p2601_p12  ;;  %p2623_p4 = scmp.lt.s32.totalorder %s2621_s11, %s2614_s19 }
  0x5d   : > { %p2618_p0 = pneg %p2617_p11  ;;  %p2624_p13 = por %p2623_p4, %p2622_p7 }
  0x5f   : > { %p2625_p6 = pnand %p2624_p13, %p2618_p0 }
  0x61   : > { %2628 = shalt.err (!%p2625_p6)
}
  0x62   : > { %s3193_s18 = smov 128   ;;  %282 = sbr.rel (%p2848_p8) target bundleno = 720 (0x2d0), region = 40 }
  0x63   : > { %2474 = dma.hbm_to_vmem [thread:$0]  (!%p2951_p2), %s2947_s8, 256, %s2955_s15, %s2957_s16, %s3193_s18, %s3193_s18, %s2752_s13  }
  0x64   : > { %s2991_s28 = sand.u32 (!%p2848_p8), 1, %s2731_s22   ;;  %p3194_p7 = scmp.ne.s32.totalorder (!%p2848_p8), %s3186_s7, 0 }
  0x65   : > { %s2994_s30 = sshll.u32 (!%p2848_p8), %s2991_s28, 4  ;;  %s285_s10 = scalar_lea.sflag (!%p2848_p8), [#allocation4], %s2991_s28 }
  0x66   : > { %s288_s19 = scalar_lea.vmem (!%p2848_p8), [#allocation3], %s2994_s30 }
  0x69   : > { %2710 = dma.done.wait (%p3194_p7), %s285_s10, 256  }
  0x6a   : > { %2712 = vsyncadd (%p3194_p7), %s285_s10, 4294967040  ;;  %p3195_p2 = scmp.ne.s32.totalorder %s3184_s29, 0 }
  0x6c   : > { %2714 = dma.done.wait (%p3195_p2), [#allocation7], 20480  }
  0x6d   : > { %2716 = vsyncadd (%p3195_p2), [#allocation7], 4294946816  ;;  %v333_v0 = vld [vmem:[#allocation6] sm:$0xff]  ;;  %v334_v1 = vld [vmem:[#allocation6 + $0x8] sm:$0xff]  ;;  %s3016_s9 = scalar_lea.vmem [#allocation9], %s2994_s30  ;;  %s1582_s13 = sshll.u32 %s2739_s24, 8 }
  0x6e   : > { %v335_v2 = vld [vmem:[#allocation6 + $0x10] sm:$0xff]  ;;  %v2114_v3 = vpack.c.bf16 %v334_v1, %v333_v0  ;;  %v336_v4 = vld [vmem:[#allocation6 + $0x18] sm:$0xff]  ;;  %v337_v6 = vld [vmem:[#allocation6 + $0x20] sm:$0xff]  ;;  %s1385_s8 = sshll.u32 %s3016_s9, 4  ;;  %s3077_s14 = scalar_lea.hbm %s3176_s5, %s1582_s13  ;;  %s3079_s8 = int_to_ptr.vmem [resolvable:$true] %s1385_s8 }
  0x6f   : > { %v2118_v5 = vpack.c.bf16 %v336_v4, %v335_v2  ;;  %v338_v7 = vld [vmem:[#allocation6 + $0x28] sm:$0xff]  ;;  %v350_v9 = vld [vmem:[%s288_s19] sm:$0xff]  ;;  %v340_v11 = vld [vmem:[#allocation6 + $0x38] sm:$0xff]  ;;  %s1365_s20 = scalar_lea.sflag [#allocation5], %s2991_s28  ;;  %s2629_s11 = scalar_lea.vmem %s3079_s8, 256 }
  0x70   : > { %2115 = vmatprep.subr.bf16.mxu0 %v2114_v3  ;;  %v2122_v8 = vpack.c.bf16 %v338_v7, %v337_v6  ;;  %v339_v10 = vld [vmem:[#allocation6 + $0x30] sm:$0xff]  ;;  %1796 = vmatprep.mubr.f32.mxu0 %v350_v9  ;;  %v870_v12 = vld [vmem:[#allocation8 + $0x200] sm:$0xff]  ;;  %v871_v13 = vld [vmem:[#allocation8 + $0x208] sm:$0xff]  ;;  %v2754_v9 = vmov 0.0   ;;  %p2630_p8 = scmp.ne.s32.totalorder %s3079_s8, %s2629_s11  ;;  %p3204_p12 = scmp.ne.s32.totalorder %s3191_s17, 0 }
  0x71   : > { %2117 = vmatpush3.bf16.msra.mxu0 %v2114_v3  ;;  %v2274_v14 = vpack.c.bf16 %v871_v13, %v870_v12  ;;  %v872_v15 = vld [vmem:[#allocation8 + $0x210] sm:$0xff]  ;;  %v873_v16 = vld [vmem:[#allocation8 + $0x218] sm:$0xff]  ;;  %v2126_v17 = vpack.c.bf16 %v340_v11, %v339_v10  ;;  %v874_v19 = vld [vmem:[#allocation8 + $0x220] sm:$0xff]  ;;  %439 = vst [vmem:[#allocation2 + $0x8] sm:$0xf] %v2754_v9  ;;  %s2755_s18 = smov [#allocation9]  }
  0x72   : > { %2119 = vmatprep.subr.bf16.mxu0 %v2118_v5  ;;  %v2278_v18 = vpack.c.bf16 %v873_v16, %v872_v15  ;;  %v875_v20 = vld [vmem:[#allocation8 + $0x228] sm:$0xff]  ;;  %v341_v21 = vld [vmem:[#allocation6 + $0x40] sm:$0xff]  ;;  %v876_v25 = vld [vmem:[#allocation8 + $0x230] sm:$0xff]  ;;  %440 = vst [vmem:[#allocation2 + $0x1c] sm:$0xf] %v2754_v9  ;;  %p2631_p1 = pnand %p2630_p8, %p3204_p12  ;;  %s2633_s10 = sshll.u32 %s2755_s18, 4  ;;  %s2634_s10 = int_to_ptr.vmem [resolvable:$false] %s2633_s10 }
  0x73   : > { %v342_v22 = vld [vmem:[#allocation6 + $0x48] sm:$0xff]  ;;  %2275 = vmatprep.subr.bf16.mxu1 %v2274_v14  ;;  %v2282_v23 = vpack.c.bf16 %v875_v20, %v874_v19  ;;  %v877_v26 = vld [vmem:[#allocation8 + $0x238] sm:$0xff]  ;;  %v343_v27 = vld [vmem:[#allocation6 + $0x50] sm:$0xff]  ;;  %441 = vst [vmem:[#allocation2 + $0x7] sm:$0x1] %v2754_v9  ;;  %p2636_p3 = scmp.lt.s32.totalorder %s3079_s8, %s2634_s10 }
  0x74   : > { %2277 = vmatpush3.bf16.msra.mxu1 %v2274_v14  ;;  %v2130_v24 = vpack.c.bf16 %v342_v22, %v341_v21  ;;  %v344_v28 = vld [vmem:[#allocation6 + $0x58] sm:$0xff]  ;;  %v2286_v29 = vpack.c.bf16 %v877_v26, %v876_v25  ;;  %v878_v31 = vld [vmem:[#allocation8 + $0x240] sm:$0xff]  ;;  %v879_v32 = vld [vmem:[#allocation8 + $0x248] sm:$0xff]  ;;  %442 = vst [vmem:[#allocation2 + $0x20] sm:$0x1] %v2754_v9  ;;  %p2632_p10 = pneg %p2631_p1 }
  0x75   : > { %2121 = vmatpush3.bf16.msra.mxu0 %v2118_v5  ;;  %2279 = vmatprep.subr.bf16.mxu1 %v2278_v18  ;;  %v2134_v30 = vpack.c.bf16 %v344_v28, %v343_v27  ;;  %v345_v33 = vld [vmem:[#allocation6 + $0x60] sm:$0xff]  ;;  %v346_v34 = vld [vmem:[#allocation6 + $0x68] sm:$0xff]  ;;  %v2290_v35 = vpack.c.bf16 %v879_v32, %v878_v31  ;;  %v347_v37 = vld [vmem:[#allocation6 + $0x70] sm:$0xff] }
  0x76   : > { %2123 = vmatprep.subr.bf16.mxu0 %v2122_v8  ;;  %v2138_v36 = vpack.c.bf16 %v346_v34, %v345_v33  ;;  %v348_v38 = vld [vmem:[#allocation6 + $0x78] sm:$0xff]  ;;  %v501_v40 = vld [vmem:[#allocation8 + $0x80] sm:$0xff]  ;;  %v502_v41 = vld [vmem:[#allocation8 + $0x88] sm:$0xff] }
  0x77   : > { %v2142_v39 = vpack.c.bf16 %v348_v38, %v347_v37  ;;  %v2146_v42 = vpack.c.bf16 %v502_v41, %v501_v40  ;;  %v503_v43 = vld [vmem:[#allocation8 + $0x90] sm:$0xff]  ;;  %v504_v44 = vld [vmem:[#allocation8 + $0x98] sm:$0xff]  ;;  %v505_v47 = vld [vmem:[#allocation8 + $0xa0] sm:$0xff] }
  0x78   : > { %2281 = vmatpush3.bf16.msra.mxu1 %v2278_v18  ;;  %v351_v45 = vld [vmem:[%s288_s19 + $0x8] sm:$0xff]  ;;  %v2150_v46 = vpack.c.bf16 %v504_v44, %v503_v43  ;;  %v507_v50 = vld [vmem:[#allocation8 + $0xb0] sm:$0xff]  ;;  %v509_v53 = vld [vmem:[#allocation8 + $0xc0] sm:$0xff]  ;;  %v443_v18 = vlaneseq  ;;  %s2635_s19 = scalar_lea.vmem %s2634_s10, 512 }
  0x79   : > { %2125 = vmatpush3.bf16.msra.mxu0 %v2122_v8  ;;  %2283 = vmatprep.subr.bf16.mxu1 %v2282_v23  ;;  %v506_v48 = vld [vmem:[#allocation8 + $0xa8] sm:$0xff]  ;;  %v508_v51 = vld [vmem:[#allocation8 + $0xb8] sm:$0xff]  ;;  %v880_v56 = vld [vmem:[#allocation8 + $0x250] sm:$0xff]  ;;  %p2637_p5 = scmp.lt.s32.totalorder %s2635_s19, %s2629_s11 }
  0x7a   : > { %2127 = vmatprep.subr.bf16.mxu0 %v2126_v17  ;;  %v2154_v49 = vpack.c.bf16 %v506_v48, %v505_v47  ;;  %v2158_v52 = vpack.c.bf16 %v508_v51, %v507_v50  ;;  %v510_v54 = vld [vmem:[#allocation8 + $0xc8] sm:$0xff]  ;;  %v881_v57 = vld [vmem:[#allocation8 + $0x258] sm:$0xff]  ;;  %v882_v59 = vld [vmem:[#allocation8 + $0x260] sm:$0xff]  ;;  %v3013_v25 = vshrl.u32 %v443_v18, 7 }
  0x7b   : > { %v2162_v55 = vpack.c.bf16 %v510_v54, %v509_v53  ;;  %v2294_v58 = vpack.c.bf16 %v881_v57, %v880_v56  ;;  %v883_v60 = vld [vmem:[#allocation8 + $0x268] sm:$0xff]  ;;  %v511_v62 = vld [vmem:[#allocation8 + $0xd0] sm:$0xff]  ;;  %v512_v63 = vld [vmem:[#allocation8 + $0xd8] sm:$0xff]  ;;  %p2638_p9 = por %p2637_p5, %p2636_p3 }
  0x7c   : > { %2285 = vmatpush3.bf16.msra.mxu1 %v2282_v23  ;;  %v2298_v61 = vpack.c.bf16 %v883_v60, %v882_v59  ;;  %v884_v0 = vld [vmem:[#allocation8 + $0x270] sm:$0xff]  ;;  %v2166_v1 = vpack.c.bf16 %v512_v63, %v511_v62  ;;  %v885_v2 = vld [vmem:[#allocation8 + $0x278] sm:$0xff]  ;;  %v513_v4 = vld [vmem:[#allocation8 + $0xe0] sm:$0xff] }
  0x7d   : > { %2129 = vmatpush3.bf16.msra.mxu0 %v2126_v17  ;;  %2287 = vmatprep.subr.bf16.mxu1 %v2286_v29  ;;  %v2302_v3 = vpack.c.bf16 %v885_v2, %v884_v0  ;;  %v514_v5 = vld [vmem:[#allocation8 + $0xe8] sm:$0xff]  ;;  %v968_v6 = vld [vmem:[#allocation8 + $0x280] sm:$0xff]  ;;  %v515_v11 = vld [vmem:[#allocation8 + $0xf0] sm:$0xff]  ;;  %v445_v2 = vadd.s32 8, %v3013_v25  ;;  %p2639_p11 = pnand %p2638_p9, %p2632_p10 }
  0x7e   : > { %2131 = vmatprep.subr.bf16.mxu0 %v2130_v24  ;;  %v2170_v7 = vpack.c.bf16 %v514_v5, %v513_v4  ;;  %v969_v8 = vld [vmem:[#allocation8 + $0x288] sm:$0xff]  ;;  %v516_v12 = vld [vmem:[#allocation8 + $0xf8] sm:$0xff]  ;;  %v482_v14 = vld [vmem:[#allocation8] sm:$0xff] }
  0x7f   : > { %v2306_v10 = vpack.c.bf16 %v969_v8, %v968_v6  ;;  %v2174_v13 = vpack.c.bf16 %v516_v12, %v515_v11  ;;  %v483_v15 = vld [vmem:[#allocation8 + $0x8] sm:$0xff]  ;;  %v1559_v17 = vld [vmem:[%s3173_s2] ss:$0 sm:$0xff]  ;;  %v970_v20 = vld [vmem:[#allocation8 + $0x290] sm:$0xff]  ;;  %v457_v9 = vand.u32 3, %v445_v2 }
  0x80   : > { %2289 = vmatpush3.bf16.msra.mxu1 %v2286_v29  ;;  %v2178_v16 = vpack.c.bf16 %v483_v15, %v482_v14  ;;  %v971_v21 = vld [vmem:[#allocation8 + $0x298] sm:$0xff]  ;;  %v972_v27 = vld [vmem:[#allocation8 + $0x2a0] sm:$0xff]  ;;  %v973_v28 = vld [vmem:[#allocation8 + $0x2a8] sm:$0xff]  ;;  %v450_v29 = vand.u32 3, %v3013_v25 }
  0x81   : > { %2133 = vmatpush3.bf16.msra.mxu0 %v2130_v24  ;;  %2291 = vmatprep.subr.bf16.mxu1 %v2290_v35  ;;  %v2310_v26 = vpack.c.bf16 %v971_v21, %v970_v20  ;;  %v484_v31 = vld [vmem:[#allocation8 + $0x10] sm:$0xff]  ;;  %v485_v32 = vld [vmem:[#allocation8 + $0x18] sm:$0xff]  ;;  %v486_v41 = vld [vmem:[#allocation8 + $0x20] sm:$0xff]  ;;  %vm3037_vm2 = vcmp.lt.s32.totalorder %v457_v9, 3  ;;  %vm3045_vm3 = vcmp.gt.s32.totalorder %v457_v9, 0 }
  0x82   : > { %2135 = vmatprep.subr.bf16.mxu0 %v2134_v30  ;;  %v974_v33 = vld [vmem:[#allocation8 + $0x2b0] sm:$0xff]  ;;  %v975_v34 = vld [vmem:[#allocation8 + $0x2b8] sm:$0xff]  ;;  %vm3021_vm0 = vcmp.lt.s32.totalorder %v450_v29, 3  ;;  %vm3027_vm1 = vcmp.gt.s32.totalorder %v450_v29, 0  ;;  %v490_v54 = vld [vmem:[#allocation8 + $0x40] sm:$0xff] }
  0x83   : > { %v2318_v43 = vpack.c.bf16 %v975_v34, %v974_v33  ;;  %v488_v48 = vld [vmem:[#allocation8 + $0x30] sm:$0xff]  ;;  %v980_v57 = vld [vmem:[#allocation8 + $0x2e0] sm:$0xff]  ;;  %v983_v0 = vld [vmem:[#allocation8 + $0x2f8] sm:$0xff] }
  0x84   : > { %2293 = vmatpush3.bf16.msra.mxu1 %v2290_v35  ;;  %v978_v51 = vld [vmem:[#allocation8 + $0x2d0] sm:$0xff]  ;;  %v495_v4 = vld [vmem:[#allocation8 + $0x68] sm:$0xff]  ;;  %v1066_v6 = vld [vmem:[#allocation8 + $0x300] sm:$0xff] }
  0x85   : > { %2137 = vmatpush3.bf16.msra.mxu0 %v2134_v30  ;;  %2295 = vmatprep.subr.bf16.mxu1 %v2294_v58  ;;  %v2314_v30 = vpack.c.bf16 %v973_v28, %v972_v27  ;;  %v492_v60 = vld [vmem:[#allocation8 + $0x50] sm:$0xff]  ;;  %v497_v11 = vld [vmem:[#allocation8 + $0x78] sm:$0xff]  ;;  %v677_v18 = vld [vmem:[#allocation8 + $0x108] sm:$0xff] }
  0x86   : > { %2139 = vmatprep.subr.bf16.mxu0 %v2138_v36  ;;  %v982_v63 = vld [vmem:[#allocation8 + $0x2f0] sm:$0xff]  ;;  %v1069_v14 = vld [vmem:[#allocation8 + $0x318] sm:$0xff]  ;;  %v1070_v21 = vld [vmem:[#allocation8 + $0x320] sm:$0xff] }
  0x87   : > { %v2334_v5 = vpack.c.bf16 %v983_v0, %v982_v63  ;;  %v678_v25 = vld [vmem:[#allocation8 + $0x110] sm:$0xff]  ;;  %v1073_v29 = vld [vmem:[#allocation8 + $0x338] sm:$0xff]  ;;  %v681_v33 = vld [vmem:[#allocation8 + $0x128] sm:$0xff] }
  0x88   : > { %2297 = vmatpush3.bf16.msra.mxu1 %v2294_v58  ;;  %v981_v58 = vld [vmem:[#allocation8 + $0x2e8] sm:$0xff]  ;;  %v1072_v28 = vld [vmem:[#allocation8 + $0x330] sm:$0xff]  ;;  %v1162_v63 = vld [vmem:[#allocation8 + $0x380] sm:$0xff] }
  0x89   : > { %2141 = vmatpush3.bf16.msra.mxu0 %v2138_v36  ;;  %2299 = vmatprep.subr.bf16.mxu1 %v2298_v61  ;;  %v2330_v62 = vpack.c.bf16 %v981_v58, %v980_v57  ;;  %v2350_v34 = vpack.c.bf16 %v1073_v29, %v1072_v28  ;;  %v1080_v57 = vld [vmem:[#allocation8 + $0x370] sm:$0xff]  ;;  %v1081_v58 = vld [vmem:[#allocation8 + $0x378] sm:$0xff]  ;;  %v1163_v0 = vld [vmem:[#allocation8 + $0x388] sm:$0xff] }
  0x8a   : > { %2143 = vmatprep.subr.bf16.mxu0 %v2142_v39  ;;  %v690_v2 = vld [vmem:[#allocation8 + $0x170] sm:$0xff]  ;;  %v775_v9 = vld [vmem:[#allocation8 + $0x188] sm:$0xff]  ;;  %v1271_v35 = vld [vmem:[#allocation8 + $0x458] sm:$0xff] }
  0x8b   : > { %v780_v29 = vld [vmem:[#allocation8 + $0x1b0] sm:$0xff]  ;;  %v1175_v38 = vld [vmem:[#allocation8 + $0x3e8] sm:$0xff] }
  0x8c   : > { %2301 = vmatpush3.bf16.msra.mxu1 %v2298_v61  ;;  %v493_v61 = vld [vmem:[#allocation8 + $0x58] sm:$0xff] }
  0x8d   : > { %2145 = vmatpush3.bf16.msra.mxu0 %v2142_v39  ;;  %2303 = vmatprep.subr.bf16.mxu1 %v2302_v3  ;;  %v2182_v39 = vpack.c.bf16 %v485_v32, %v484_v31  ;;  %v680_v32 = vld [vmem:[#allocation8 + $0x120] sm:$0xff] }
  0x8e   : > { %2147 = vmatprep.subr.bf16.mxu0 %v2146_v42 }
  0x90   : > { %1797 = vmatmul.mubr.f32.vlgmr.msra.gmra.mrb[0].mxu0 %v351_v45  ;;  %2305 = vmatpush3.bf16.msra.mxu1 %v2302_v3  ;;  %v976_v45 = vld [vmem:[#allocation8 + $0x2c0] sm:$0xff] }
  0x91   : > { %2149 = vmatpush3.bf16.msra.mxu0 %v2146_v42  ;;  %2307 = vmatprep.subr.bf16.mxu1 %v2306_v10  ;;  %v487_v42 = vld [vmem:[#allocation8 + $0x28] sm:$0xff]  ;;  %v494_v3 = vld [vmem:[#allocation8 + $0x60] sm:$0xff] }
  0x92   : > { %2151 = vmatprep.subr.bf16.mxu0 %v2150_v46  ;;  %v2186_v47 = vpack.c.bf16 %v487_v42, %v486_v41  ;;  %v2202_v8 = vpack.c.bf16 %v495_v4, %v494_v3  ;;  %v2218_v41 = vpack.c.bf16 %v681_v33, %v680_v32  ;;  %v682_v42 = vld [vmem:[#allocation8 + $0x130] sm:$0xff]  ;;  %v691_v3 = vld [vmem:[#allocation8 + $0x178] sm:$0xff]  ;;  %v2370_v4 = vpack.c.bf16 %v1163_v0, %v1162_v63  ;;  %v1264_v0 = vld [vmem:[#allocation8 + $0x420] sm:$0xff] }
  0x93   : > { %v1172_v33 = vld [vmem:[#allocation8 + $0x3d0] sm:$0xff] }
  0x95   : > { %2153 = vmatpush3.bf16.msra.mxu0 %v2150_v46  ;;  %v977_v46 = vld [vmem:[#allocation8 + $0x2c8] sm:$0xff] }
  0x96   : > { %2155 = vmatprep.subr.bf16.mxu0 %v2154_v49  ;;  %v2322_v50 = vpack.c.bf16 %v977_v46, %v976_v45  ;;  %v1076_v45 = vld [vmem:[#allocation8 + $0x350] sm:$0xff]  ;;  %v1077_v46 = vld [vmem:[#allocation8 + $0x358] sm:$0xff] }
  0x99   : > { %2157 = vmatpush3.bf16.msra.mxu0 %v2154_v49  ;;  %v489_v49 = vld [vmem:[#allocation8 + $0x38] sm:$0xff] }
  0x9a   : > { %2159 = vmatprep.subr.bf16.mxu0 %v2158_v52  ;;  %v2190_v53 = vpack.c.bf16 %v489_v49, %v488_v48  ;;  %v684_v48 = vld [vmem:[#allocation8 + $0x140] sm:$0xff]  ;;  %v685_v49 = vld [vmem:[#allocation8 + $0x148] sm:$0xff] }
  0x9d   : > { %2161 = vmatpush3.bf16.msra.mxu0 %v2158_v52  ;;  %v979_v52 = vld [vmem:[#allocation8 + $0x2d8] sm:$0xff] }
  0x9e   : > { %2163 = vmatprep.subr.bf16.mxu0 %v2162_v55  ;;  %v2326_v56 = vpack.c.bf16 %v979_v52, %v978_v51  ;;  %v1078_v51 = vld [vmem:[#allocation8 + $0x360] sm:$0xff]  ;;  %v1079_v52 = vld [vmem:[#allocation8 + $0x368] sm:$0xff] }
  0xa1   : > { %2165 = vmatpush3.bf16.msra.mxu0 %v2162_v55  ;;  %v491_v55 = vld [vmem:[#allocation8 + $0x48] sm:$0xff] }
  0xa2   : > { %2167 = vmatprep.subr.bf16.mxu0 %v2166_v1  ;;  %v2194_v59 = vpack.c.bf16 %v491_v55, %v490_v54  ;;  %v686_v54 = vld [vmem:[#allocation8 + $0x150] sm:$0xff]  ;;  %v687_v55 = vld [vmem:[#allocation8 + $0x158] sm:$0xff] }
  0xa5   : > { %2169 = vmatpush3.bf16.msra.mxu0 %v2166_v1  ;;  %v2198_v1 = vpack.c.bf16 %v493_v61, %v492_v60  ;;  %v688_v60 = vld [vmem:[#allocation8 + $0x160] sm:$0xff]  ;;  %v689_v61 = vld [vmem:[#allocation8 + $0x168] sm:$0xff] }
  0xa6   : > { %2171 = vmatprep.subr.bf16.mxu0 %v2170_v7 }
  0xa9   : > { %2173 = vmatpush3.bf16.msra.mxu0 %v2170_v7  ;;  %v1067_v7 = vld [vmem:[#allocation8 + $0x308] sm:$0xff] }
  0xaa   : > { %2175 = vmatprep.subr.bf16.mxu0 %v2174_v13  ;;  %v2338_v12 = vpack.c.bf16 %v1067_v7, %v1066_v6  ;;  %v1165_v6 = vld [vmem:[#allocation8 + $0x398] sm:$0xff]  ;;  %v2238_v7 = vpack.c.bf16 %v691_v3, %v690_v2  ;;  %v1266_v3 = vld [vmem:[#allocation8 + $0x430] sm:$0xff] }
  0xad   : > { %2177 = vmatpush3.bf16.msra.mxu0 %v2174_v13  ;;  %v1068_v13 = vld [vmem:[#allocation8 + $0x310] sm:$0xff] }
  0xae   : > { %2179 = vmatprep.subr.bf16.mxu0 %v2178_v16 }
 0x163   : > { %v1798_v19 = vpop.f32.mrb[0].mxu0 }
 0x164   : > { %v430_v22 = vadd.f32 %v1798_v19, %v1559_v17  ;;  %v424_v23 = vpop.f32.mrb[1].mxu0  ;;  %v2342_v19 = vpack.c.bf16 %v1069_v14, %v1068_v13  ;;  %v1167_v13 = vld [vmem:[#allocation8 + $0x3a8] sm:$0xff] }
 0x165   : > { %v425_v24 = vadd.f32 %v1559_v17, %v424_v23  ;;  %v676_v17 = vld [vmem:[#allocation8 + $0x100] sm:$0xff] }
 0x166   : > { %434 = vst [vmem:[#allocation2 + $0x14] sm:$0xff] %v430_v22  ;;  %438 = vst [vmem:[%s3016_s9 + $0x8] sm:$0xff] %v430_v22 }
 0x167   : > { %433 = vst [vmem:[#allocation2 + $0xc] sm:$0xff] %v425_v24  ;;  %1971 = vmatprep.mubr.f32.mxu1 %v425_v24  ;;  %437 = vst [vmem:[%s3016_s9] sm:$0xff] %v425_v24  ;;  %v2210_v24 = vpack.c.bf16 %v677_v18, %v676_v17  ;;  %v777_v17 = vld [vmem:[#allocation8 + $0x198] sm:$0xff] }
 0x168   : > { %1972 = vmatmul.mubr.f32.vlgmr.msra.gmra.mrb[0].mxu1 %v430_v22  ;;  %v1071_v22 = vld [vmem:[#allocation8 + $0x328] sm:$0xff] }
 0x169   : > { %2309 = vmatpush3.bf16.msra.mxu1 %v2306_v10  ;;  %v496_v10 = vld [vmem:[#allocation8 + $0x70] sm:$0xff]  ;;  %v2346_v27 = vpack.c.bf16 %v1071_v22, %v1070_v21 }
 0x16a   : > { %2311 = vmatprep.subr.bf16.mxu1 %v2310_v26  ;;  %v2206_v15 = vpack.c.bf16 %v497_v11, %v496_v10 }
 0x16d   : > { %2313 = vmatpush3.bf16.msra.mxu1 %v2310_v26  ;;  %v964_v20 = vld [vmem:[#allocation2 + $0x15] sm:$0xff]  ;;  %v679_v26 = vld [vmem:[#allocation8 + $0x118] sm:$0xff] }
 0x16e   : > { %v498_v36 = vld [vmem:[#allocation2 + $0x8] sm:$0xff]  ;;  %v3025_v37 = vld [vmem:[#allocation2 + $0x10] sm:$0xff]  ;;  %2315 = vmatprep.subr.bf16.mxu1 %v2314_v30  ;;  %v2214_v31 = vpack.c.bf16 %v679_v26, %v678_v25  ;;  %v1160_v63 = vld [vmem:[#allocation2 + $0x18] sm:$0xff] }
 0x16f   : > { %1831 = vmatprep.mubr.f32.mxu0 %v498_v36  ;;  %v963_v40 = vld [vmem:[#allocation2 + $0xd] sm:$0xff]  ;;  %v1062_v11 = vld [vmem:[#allocation2 + $0x17] sm:$0xff] }
 0x170   : > { %1832 = vmatmul.mubr.f32.vlgmr.msra.gmra.mrb[2].mxu0 %v3025_v37  ;;  %v474_v44 = vld [vmem:[#allocation2 + $0x7] sm:$0xff]  ;;  %2006 = vmatprep.mubr.msk.f32.mxu1 %vm3021_vm0, %v963_v40  ;;  %v475_v23 = vld [vmem:[#allocation2 + $0xf] sm:$0xff] }
 0x171   : > { %2181 = vmatpush3.bf16.msra.mxu0 %v2178_v16  ;;  %1866 = vmatprep.mubr.msk.f32.mxu0 %vm3027_vm1, %v474_v44  ;;  %v667_v36 = vld [vmem:[#allocation2 + $0x9] sm:$0xff]  ;;  %v3056_v22 = vld [vmem:[#allocation2 + $0x11] sm:$0xff] }
 0x172   : > { %2183 = vmatprep.subr.bf16.mxu0 %v2182_v39  ;;  %2317 = vmatpush3.bf16.msra.mxu1 %v2314_v30  ;;  %v1075_v40 = vld [vmem:[#allocation8 + $0x348] sm:$0xff]  ;;  %v1170_v26 = vld [vmem:[#allocation8 + $0x3c0] sm:$0xff] }
 0x173   : > { %2319 = vmatprep.subr.bf16.mxu1 %v2318_v43 }
 0x175   : > { %2185 = vmatpush3.bf16.msra.mxu0 %v2182_v39  ;;  %v1074_v39 = vld [vmem:[#allocation8 + $0x340] sm:$0xff] }
 0x176   : > { %2187 = vmatprep.subr.bf16.mxu0 %v2186_v47  ;;  %2321 = vmatpush3.bf16.msra.mxu1 %v2318_v43  ;;  %v683_v43 = vld [vmem:[#allocation8 + $0x138] sm:$0xff]  ;;  %v2354_v44 = vpack.c.bf16 %v1075_v40, %v1074_v39  ;;  %v782_v39 = vld [vmem:[#allocation8 + $0x1c0] sm:$0xff]  ;;  %v783_v40 = vld [vmem:[#allocation8 + $0x1c8] sm:$0xff] }
 0x177   : > { %2323 = vmatprep.subr.bf16.mxu1 %v2322_v50 }
 0x179   : > { %2189 = vmatpush3.bf16.msra.mxu0 %v2186_v47  ;;  %v2222_v47 = vpack.c.bf16 %v683_v43, %v682_v42  ;;  %v1174_v42 = vld [vmem:[#allocation8 + $0x3e0] sm:$0xff]  ;;  %v2258_v43 = vpack.c.bf16 %v783_v40, %v782_v39 }
 0x17a   : > { %2191 = vmatprep.subr.bf16.mxu0 %v2190_v53  ;;  %2325 = vmatpush3.bf16.msra.mxu1 %v2322_v50  ;;  %v2358_v50 = vpack.c.bf16 %v1077_v46, %v1076_v45  ;;  %v785_v45 = vld [vmem:[#allocation8 + $0x1d8] sm:$0xff]  ;;  %v2394_v46 = vpack.c.bf16 %v1175_v38, %v1174_v42 }
 0x17b   : > { %2327 = vmatprep.subr.bf16.mxu1 %v2326_v56 }
 0x17d   : > { %2193 = vmatpush3.bf16.msra.mxu0 %v2190_v53  ;;  %v2226_v53 = vpack.c.bf16 %v685_v49, %v684_v48  ;;  %v1177_v48 = vld [vmem:[#allocation8 + $0x3f8] sm:$0xff] }
 0x17e   : > { %2195 = vmatprep.subr.bf16.mxu0 %v2194_v59  ;;  %2329 = vmatpush3.bf16.msra.mxu1 %v2326_v56  ;;  %v2362_v56 = vpack.c.bf16 %v1079_v52, %v1078_v51  ;;  %v787_v51 = vld [vmem:[#allocation8 + $0x1e8] sm:$0xff] }
 0x17f   : > { %2331 = vmatprep.subr.bf16.mxu1 %v2330_v62 }
 0x181   : > { %2197 = vmatpush3.bf16.msra.mxu0 %v2194_v59  ;;  %v2230_v59 = vpack.c.bf16 %v687_v55, %v686_v54  ;;  %v1261_v54 = vld [vmem:[#allocation8 + $0x408] sm:$0xff] }
 0x182   : > { %2199 = vmatprep.subr.bf16.mxu0 %v2198_v1  ;;  %2333 = vmatpush3.bf16.msra.mxu1 %v2330_v62  ;;  %v2366_v62 = vpack.c.bf16 %v1081_v58, %v1080_v57  ;;  %v789_v57 = vld [vmem:[#allocation8 + $0x1f8] sm:$0xff] }
 0x183   : > { %2335 = vmatprep.subr.bf16.mxu1 %v2334_v5 }
 0x185   : > { %2201 = vmatpush3.bf16.msra.mxu0 %v2198_v1  ;;  %v2234_v1 = vpack.c.bf16 %v689_v61, %v688_v60  ;;  %v1263_v60 = vld [vmem:[#allocation8 + $0x418] sm:$0xff] }
 0x186   : > { %2203 = vmatprep.subr.bf16.mxu0 %v2202_v8  ;;  %2337 = vmatpush3.bf16.msra.mxu1 %v2334_v5  ;;  %v1164_v5 = vld [vmem:[#allocation8 + $0x390] sm:$0xff] }
 0x187   : > { %2339 = vmatprep.subr.bf16.mxu1 %v2338_v12  ;;  %v2374_v10 = vpack.c.bf16 %v1165_v6, %v1164_v5  ;;  %v770_v5 = vld [vmem:[#allocation2 + $0x13] sm:$0xff] }
 0x189   : > { %2205 = vmatpush3.bf16.msra.mxu0 %v2202_v8  ;;  %2007 = vmatmul.mubr.msk.f32.vlgmr.msra.gmra.mrb[0].mxu1 %vm3037_vm2, %v964_v20  ;;  %v774_v8 = vld [vmem:[#allocation8 + $0x180] sm:$0xff]  ;;  %v1169_v20 = vld [vmem:[#allocation8 + $0x3b8] sm:$0xff] }
 0x18a   : > { %2207 = vmatprep.subr.bf16.mxu0 %v2206_v15  ;;  %2341 = vmatpush3.bf16.msra.mxu1 %v2338_v12  ;;  %v1166_v12 = vld [vmem:[#allocation8 + $0x3a0] sm:$0xff]  ;;  %v2242_v14 = vpack.c.bf16 %v775_v9, %v774_v8  ;;  %v1269_v8 = vld [vmem:[#allocation8 + $0x448] sm:$0xff] }
 0x18b   : > { %2041 = vmatprep.mubr.msk.f32.mxu1 %vm3027_vm1, %v475_v23  ;;  %2343 = vmatprep.subr.bf16.mxu1 %v2342_v19  ;;  %v2378_v18 = vpack.c.bf16 %v1167_v13, %v1166_v12  ;;  %v1272_v12 = vld [vmem:[#allocation8 + $0x460] sm:$0xff]  ;;  %v1273_v13 = vld [vmem:[#allocation8 + $0x468] sm:$0xff] }
 0x18c   : > { %v2426_v30 = vpack.c.bf16 %v1273_v13, %v1272_v12 }
 0x18d   : > { %2209 = vmatpush3.bf16.msra.mxu0 %v2206_v15  ;;  %v776_v15 = vld [vmem:[#allocation8 + $0x190] sm:$0xff] }
 0x18e   : > { %2211 = vmatprep.subr.bf16.mxu0 %v2210_v24  ;;  %2345 = vmatpush3.bf16.msra.mxu1 %v2342_v19  ;;  %v1168_v19 = vld [vmem:[#allocation8 + $0x3b0] sm:$0xff]  ;;  %v2246_v21 = vpack.c.bf16 %v777_v17, %v776_v15  ;;  %v1275_v15 = vld [vmem:[#allocation8 + $0x478] sm:$0xff] }
 0x18f   : > { %2347 = vmatprep.subr.bf16.mxu1 %v2346_v27  ;;  %v2382_v25 = vpack.c.bf16 %v1169_v20, %v1168_v19 }
 0x190   : > { %1867 = vmatmul.mubr.msk.f32.vlgmr.msra.gmra.mrb[2].mxu0 %vm3045_vm3, %v475_v23  ;;  %v778_v23 = vld [vmem:[#allocation8 + $0x1a0] sm:$0xff] }
 0x191   : > { %2213 = vmatpush3.bf16.msra.mxu0 %v2210_v24  ;;  %1901 = vmatprep.mubr.msk.f32.mxu0 %vm3021_vm0, %v667_v36  ;;  %v779_v24 = vld [vmem:[#allocation8 + $0x1a8] sm:$0xff] }
 0x192   : > { %2215 = vmatprep.subr.bf16.mxu0 %v2214_v31  ;;  %2349 = vmatpush3.bf16.msra.mxu1 %v2346_v27  ;;  %v1171_v27 = vld [vmem:[#allocation8 + $0x3c8] sm:$0xff]  ;;  %v2250_v28 = vpack.c.bf16 %v779_v24, %v778_v23 }
 0x193   : > { %2351 = vmatprep.subr.bf16.mxu1 %v2350_v34  ;;  %v2386_v32 = vpack.c.bf16 %v1171_v27, %v1170_v26 }
 0x195   : > { %2217 = vmatpush3.bf16.msra.mxu0 %v2214_v31  ;;  %v781_v31 = vld [vmem:[#allocation8 + $0x1b8] sm:$0xff] }
 0x196   : > { %2219 = vmatprep.subr.bf16.mxu0 %v2218_v41  ;;  %2353 = vmatpush3.bf16.msra.mxu1 %v2350_v34  ;;  %v1173_v34 = vld [vmem:[#allocation8 + $0x3d8] sm:$0xff]  ;;  %v2254_v36 = vpack.c.bf16 %v781_v31, %v780_v29 }
 0x197   : > { %2355 = vmatprep.subr.bf16.mxu1 %v2354_v44 }
 0x199   : > { %2221 = vmatpush3.bf16.msra.mxu0 %v2218_v41  ;;  %v2390_v41 = vpack.c.bf16 %v1173_v34, %v1172_v33 }
 0x19a   : > { %2223 = vmatprep.subr.bf16.mxu0 %v2222_v47  ;;  %2357 = vmatpush3.bf16.msra.mxu1 %v2354_v44  ;;  %v784_v44 = vld [vmem:[#allocation8 + $0x1d0] sm:$0xff] }
 0x19b   : > { %2359 = vmatprep.subr.bf16.mxu1 %v2358_v50  ;;  %v2262_v49 = vpack.c.bf16 %v785_v45, %v784_v44 }
 0x19d   : > { %2225 = vmatpush3.bf16.msra.mxu0 %v2222_v47  ;;  %v1176_v47 = vld [vmem:[#allocation8 + $0x3f0] sm:$0xff] }
 0x19e   : > { %2227 = vmatprep.subr.bf16.mxu0 %v2226_v53  ;;  %2361 = vmatpush3.bf16.msra.mxu1 %v2358_v50  ;;  %v786_v50 = vld [vmem:[#allocation8 + $0x1e0] sm:$0xff]  ;;  %v2398_v52 = vpack.c.bf16 %v1177_v48, %v1176_v47 }
 0x19f   : > { %2363 = vmatprep.subr.bf16.mxu1 %v2362_v56  ;;  %v2266_v55 = vpack.c.bf16 %v787_v51, %v786_v50 }
 0x1a1   : > { %2229 = vmatpush3.bf16.msra.mxu0 %v2226_v53  ;;  %v1260_v53 = vld [vmem:[#allocation8 + $0x400] sm:$0xff] }
 0x1a2   : > { %2231 = vmatprep.subr.bf16.mxu0 %v2230_v59  ;;  %2365 = vmatpush3.bf16.msra.mxu1 %v2362_v56  ;;  %v788_v56 = vld [vmem:[#allocation8 + $0x1f0] sm:$0xff]  ;;  %v2402_v58 = vpack.c.bf16 %v1261_v54, %v1260_v53 }
 0x1a3   : > { %2367 = vmatprep.subr.bf16.mxu1 %v2366_v62  ;;  %v2270_v61 = vpack.c.bf16 %v789_v57, %v788_v56 }
 0x1a5   : > { %2233 = vmatpush3.bf16.msra.mxu0 %v2230_v59  ;;  %v1262_v59 = vld [vmem:[#allocation8 + $0x410] sm:$0xff] }
 0x1a6   : > { %2235 = vmatprep.subr.bf16.mxu0 %v2234_v1  ;;  %2369 = vmatpush3.bf16.msra.mxu1 %v2366_v62  ;;  %v2406_v62 = vpack.c.bf16 %v1263_v60, %v1262_v59 }
 0x1a7   : > { %2371 = vmatprep.subr.bf16.mxu1 %v2370_v4 }
 0x1a9   : > { %2237 = vmatpush3.bf16.msra.mxu0 %v2234_v1  ;;  %2042 = vmatmul.mubr.msk.f32.vlgmr.msra.gmra.mrb[0].mxu1 %vm3045_vm3, %v1062_v11  ;;  %v1265_v1 = vld [vmem:[#allocation8 + $0x428] sm:$0xff] }
 0x1aa   : > { %2239 = vmatprep.subr.bf16.mxu0 %v2238_v7  ;;  %2373 = vmatpush3.bf16.msra.mxu1 %v2370_v4  ;;  %v2410_v2 = vpack.c.bf16 %v1265_v1, %v1264_v0  ;;  %v1267_v4 = vld [vmem:[#allocation8 + $0x438] sm:$0xff] }
 0x1ab   : > { %2076 = vmatprep.mubr.f32.mxu1 %v3025_v37  ;;  %2375 = vmatprep.subr.bf16.mxu1 %v2374_v10  ;;  %v769_v37 = vld [vmem:[#allocation2 + $0xb] sm:$0xff]  ;;  %v2414_v6 = vpack.c.bf16 %v1267_v4, %v1266_v3 }
 0x1ad   : > { %2241 = vmatpush3.bf16.msra.mxu0 %v2238_v7  ;;  %v1268_v7 = vld [vmem:[#allocation8 + $0x440] sm:$0xff] }
 0x1ae   : > { %2243 = vmatprep.subr.bf16.mxu0 %v2242_v14  ;;  %2377 = vmatpush3.bf16.msra.mxu1 %v2374_v10  ;;  %v2418_v9 = vpack.c.bf16 %v1269_v8, %v1268_v7  ;;  %v1270_v10 = vld [vmem:[#allocation8 + $0x450] sm:$0xff] }
 0x1af   : > { %2379 = vmatprep.subr.bf16.mxu1 %v2378_v18  ;;  %v2422_v11 = vpack.c.bf16 %v1271_v35, %v1270_v10 }
 0x1b0   : > { %1902 = vmatmul.mubr.msk.f32.vlgmr.msra.gmra.mrb[2].mxu0 %vm3037_vm2, %v3056_v22 }
 0x1b1   : > { %2245 = vmatpush3.bf16.msra.mxu0 %v2242_v14  ;;  %1936 = vmatprep.mubr.msk.f32.mxu0 %vm3027_vm1, %v769_v37  ;;  %v1274_v14 = vld [vmem:[#allocation8 + $0x470] sm:$0xff] }
 0x1b2   : > { %2247 = vmatprep.subr.bf16.mxu0 %v2246_v21  ;;  %2381 = vmatpush3.bf16.msra.mxu1 %v2378_v18  ;;  %v2430_v17 = vpack.c.bf16 %v1275_v15, %v1274_v14  ;;  %v1256_v18 = vld [vmem:[#allocation2 + $0x19] sm:$0xff] }
 0x1b3   : > { %2383 = vmatprep.subr.bf16.mxu1 %v2382_v25 }
 0x1b5   : > { %2249 = vmatpush3.bf16.msra.mxu0 %v2246_v21 }
 0x1b6   : > { %2251 = vmatprep.subr.bf16.mxu0 %v2250_v28  ;;  %2385 = vmatpush3.bf16.msra.mxu1 %v2382_v25 }
 0x1b7   : > { %2387 = vmatprep.subr.bf16.mxu1 %v2386_v32 }
 0x1b9   : > { %2253 = vmatpush3.bf16.msra.mxu0 %v2250_v28 }
 0x1ba   : > { %2255 = vmatprep.subr.bf16.mxu0 %v2254_v36  ;;  %2389 = vmatpush3.bf16.msra.mxu1 %v2386_v32 }
 0x1bb   : > { %2391 = vmatprep.subr.bf16.mxu1 %v2390_v41 }
 0x1bd   : > { %2257 = vmatpush3.bf16.msra.mxu0 %v2254_v36 }
 0x1be   : > { %2259 = vmatprep.subr.bf16.mxu0 %v2258_v43  ;;  %2393 = vmatpush3.bf16.msra.mxu1 %v2390_v41 }
 0x1bf   : > { %2395 = vmatprep.subr.bf16.mxu1 %v2394_v46 }
 0x1c1   : > { %2261 = vmatpush3.bf16.msra.mxu0 %v2258_v43 }
 0x1c2   : > { %2263 = vmatprep.subr.bf16.mxu0 %v2262_v49  ;;  %2397 = vmatpush3.bf16.msra.mxu1 %v2394_v46 }
 0x1c3   : > { %2399 = vmatprep.subr.bf16.mxu1 %v2398_v52 }
 0x1c5   : > { %2265 = vmatpush3.bf16.msra.mxu0 %v2262_v49 }
 0x1c6   : > { %2267 = vmatprep.subr.bf16.mxu0 %v2266_v55  ;;  %2401 = vmatpush3.bf16.msra.mxu1 %v2398_v52 }
 0x1c7   : > { %2403 = vmatprep.subr.bf16.mxu1 %v2402_v58 }
 0x1c9   : > { %2269 = vmatpush3.bf16.msra.mxu0 %v2266_v55  ;;  %2077 = vmatmul.mubr.f32.vlgmr.msra.gmra.mrb[0].mxu1 %v1160_v63 }
 0x1ca   : > { %2271 = vmatprep.subr.bf16.mxu0 %v2270_v61  ;;  %2405 = vmatpush3.bf16.msra.mxu1 %v2402_v58 }
 0x1cb   : > { %2111 = vmatprep.mubr.msk.f32.mxu1 %vm3021_vm0, %v3056_v22  ;;  %2407 = vmatprep.subr.bf16.mxu1 %v2406_v62 }
 0x1cd   : > { %2273 = vmatpush3.bf16.msra.mxu0 %v2270_v61 }
 0x1ce   : > { %2409 = vmatpush3.bf16.msra.mxu1 %v2406_v62 }
 0x1cf   : > { %2411 = vmatprep.subr.bf16.mxu1 %v2410_v2 }
 0x1d0   : > { %1937 = vmatmul.mubr.msk.f32.vlgmr.msra.gmra.mrb[2].mxu0 %vm3045_vm3, %v770_v5 }
 0x1d2   : > { %2413 = vmatpush3.bf16.msra.mxu1 %v2410_v2 }
 0x1d3   : > { %2415 = vmatprep.subr.bf16.mxu1 %v2414_v6 }
 0x1d6   : > { %2417 = vmatpush3.bf16.msra.mxu1 %v2414_v6 }
 0x1d7   : > { %2419 = vmatprep.subr.bf16.mxu1 %v2418_v9 }
 0x1da   : > { %2421 = vmatpush3.bf16.msra.mxu1 %v2418_v9 }
 0x1db   : > { %2423 = vmatprep.subr.bf16.mxu1 %v2422_v11 }
 0x1de   : > { %2425 = vmatpush3.bf16.msra.mxu1 %v2422_v11 }
 0x1df   : > { %2427 = vmatprep.subr.bf16.mxu1 %v2426_v30 }
 0x1e2   : > { %2429 = vmatpush3.bf16.msra.mxu1 %v2426_v30 }
 0x1e3   : > { %2431 = vmatprep.subr.bf16.mxu1 %v2430_v17 }
 0x1e6   : > { %2433 = vmatpush3.bf16.msra.mxu1 %v2430_v17 }
 0x1e9   : > { %2112 = vmatmul.mubr.msk.f32.vlgmr.msra.gmra.mrb[0].mxu1 %vm3037_vm2, %v1256_v18 }
 0x1ea   : > { %2642 = shalt.err (!%p2639_p11)
}
 0x1eb   : > { %s2643_s29 = scalar_lea.hbm %s3077_s14, 256  ;;  %s2647_s15 = scalar_lea.hbm %s3176_s5, 512 }
 0x1ec   : > { %p2644_p0 = scmp.ne.s32.totalorder %s3077_s14, %s2643_s29  ;;  %p2648_p6 = scmp.lt.u32.totalorder %s3077_s14, %s3176_s5 }
 0x1ed   : > { %p2649_p7 = scmp.lt.u32.totalorder %s2647_s15, %s2643_s29  ;;  %p2651_p8 = scmp.lt.u32.totalorder %s2643_s29, %s3077_s14 }
 0x1ee   : > { %p2645_p4 = pnand %p2644_p0, %p3204_p12 }
 0x1ef   : > { %p2650_p2 = por %p2649_p7, %p2648_p6 }
 0x1f0   : > { %p2646_p13 = pneg %p2645_p4 }
 0x1f1   : > { %p2652_p1 = por %p2651_p8, %p2650_p2 }
 0x1f3   : > { %p2653_p10 = pnand %p2652_p1, %p2646_p13 }
 0x1f5   : > { %2656 = shalt.err (!%p2653_p10)
}
 0x1f6   : > { %s2756_s11 = smov 128   ;;  %s2757_s10 = smov 8   ;;  %v1572_v21 = vld [vmem:[%s3175_s4] ss:$0 sm:$0xff] }
 0x1f7   : > { %2460 = dma.vmem_to_hbm [thread:$0]  (%p3204_p12), %s3079_s8, 256, %s3077_s14, %s1365_s20, %s2756_s11, %s2756_s11, %s2757_s10  }
 0x1f8   : > { %s329_s7 = scalar_lea.vmem [#allocation10], %s2994_s30  ;;  %s3119_s20 = scalar_lea.hbm %s3177_s6, %s1582_s13 }
 0x1f9   : > { %s1403_s9 = sshll.u32 %s329_s7, 4  ;;  %s1370_s30 = scalar_lea.sflag [#allocation11], %s2991_s28  ;;  %s3112_s9 = int_to_ptr.vmem [resolvable:$true] %s1403_s9 }
 0x1fa   : > { %s2657_s15 = scalar_lea.vmem %s3112_s9, 256  ;;  %s2758_s16 = smov [#allocation10]  }
 0x1fb   : > { %p2658_p3 = scmp.ne.s32.totalorder %s3112_s9, %s2657_s15  ;;  %s2661_s18 = sshll.u32 %s2758_s16, 4  ;;  %s2662_s18 = int_to_ptr.vmem [resolvable:$false] %s2661_s18 }
 0x1fc   : > { %s2663_s19 = scalar_lea.vmem %s2662_s18, 512  ;;  %p2664_p11 = scmp.lt.s32.totalorder %s3112_s9, %s2662_s18 }
 0x1fd   : > { %p2659_p5 = pnand %p2658_p3, %p3204_p12  ;;  %p2665_p0 = scmp.lt.s32.totalorder %s2663_s19, %s2657_s15 }
 0x1ff   : > { %p2660_p9 = pneg %p2659_p5  ;;  %p2666_p4 = por %p2665_p0, %p2664_p11 }
 0x201   : > { %p2667_p13 = pnand %p2666_p4, %p2660_p9 }
 0x2a3   : > { %v1938_v16 = vpop.f32.mrb[2].mxu0 }
 0x2a4   : > { %v856_v19 = vpop.f32.mrb[3].mxu0 }
 0x2bc   : > { %v2113_v20 = vpop.f32.mrb[0].mxu1 }
 0x2bd   : > { %v2434_v22 = vadd.f32 %v2113_v20, %v1938_v16  ;;  %v1342_v23 = vpop.f32.mrb[1].mxu1 }
 0x2be   : > { %v2435_v24 = vadd.f32 %v1342_v23, %v856_v19 }
 0x2bf   : > { %v1361_v25 = vadd.f32 %v2434_v22, %v1572_v21 }
 0x2c0   : > { %v1360_v37 = vadd.f32 %v2435_v24, %v1572_v21 }
 0x2c1   : > { %1363 = vst [vmem:[%s329_s7 + $0x8] sm:$0xff] %v1361_v25 }
 0x2c2   : > { %1362 = vst [vmem:[%s329_s7] sm:$0xff] %v1360_v37 }
 0x2c3   : > { %2670 = shalt.err (!%p2667_p13)
}
 0x2c4   : > { %s2671_s24 = scalar_lea.hbm %s3119_s20, 256  ;;  %s2675_s7 = scalar_lea.hbm %s3177_s6, 512 }
 0x2c5   : > { %p2672_p6 = scmp.ne.s32.totalorder %s3119_s20, %s2671_s24  ;;  %p2676_p8 = scmp.lt.u32.totalorder %s3119_s20, %s3177_s6 }
 0x2c6   : > { %p2677_p1 = scmp.lt.u32.totalorder %s2675_s7, %s2671_s24  ;;  %p2679_p3 = scmp.lt.u32.totalorder %s2671_s24, %s3119_s20 }
 0x2c7   : > { %p2673_p7 = pnand %p2672_p6, %p3204_p12 }
 0x2c8   : > { %p2678_p10 = por %p2677_p1, %p2676_p8 }
 0x2c9   : > { %p2674_p2 = pneg %p2673_p7 }
 0x2ca   : > { %p2680_p5 = por %p2679_p3, %p2678_p10 }
 0x2cc   : > { %p2681_p9 = pnand %p2680_p5, %p2674_p2 }
 0x2ce   : > { %2684 = shalt.err (!%p2681_p9)
}
 0x2cf   : > { %2461 = dma.vmem_to_hbm [thread:$0]  (%p3204_p12), %s3112_s9, 256, %s3119_s20, %s1370_s30, %s2756_s11, %s2756_s11, %s2757_s10  }
 0x2d0 PF: > { %s3205_s15 = sld [smem:[#allocation16_spill]]  ;;  %s1418_s16 = sand.u32 1, %s2727_s21  }
 0x2d1   : > { %p3207_p0 = scmp.ge.s32.totalorder %s2747_s26, 2  ;;  %s1419_s18 = scalar_lea.sflag [#allocation5], %s1418_s16 }
 0x2d6   : > { %p3206_p11 = scmp.ne.s32.totalorder %s3205_s15, 0 }
 0x2d8   : > { %p2476_p4 = pnand %p3207_p0, %p3206_p11 }
 0x2da   : > { %2718 = dma.done.wait (!%p2476_p4), %s1419_s18, 256  }
 0x2db   : > { %2720 = vsyncadd (!%p2476_p4), %s1419_s18, 4294967040  ;;  %s1428_s17 = scalar_lea.sflag [#allocation11], %s1418_s16 }
 0x2dc   : > { %2722 = dma.done.wait (!%p2476_p4), %s1428_s17, 256  }
 0x2dd   : > { %2724 = vsyncadd (!%p2476_p4), %s1428_s17, 4294967040  ;;  %s27_s26 = sadd.s32 1, %s2747_s26   ;;  %s3208_s21 = smov %s2731_s22 }
 0x2de   : > { %p24_p13 = scmp.ge.s32.totalorder %s27_s26, 4   ;;  %s3209_s22 = smov %s2735_s23 }
 0x2df   : > { %s3210_s23 = smov %s2942_s27  ;;  %s3211_s24 = smov %s2743_s25 }
 0x2e0   : > { %s3212_s25 = smov %s3214_s12  ;;  %26 = sbr.rel (!%p24_p13) target bundleno = 9 (0x9), region = 118 }
 0x2e7   :  { %1433 = vsyncpa [#allocation4], 1 }
 0x2e8   :  { %1435 = vsyncpa [#allocation4 + $0x1], 1 }
 0x2e9   :  { %1436 = vsyncpa [#allocation7], 1 }
 0x2ea   :  { %1437 = vsyncpa [#allocation5], 1 }
 0x2eb   :  { %1439 = vsyncpa [#allocation5 + $0x1], 1 }
 0x2ec   :  { %1440 = vsyncpa [#allocation11], 1 }
 0x2ed   :  { %1442 = vsyncpa [#allocation11 + $0x1], 1 }

</bundles_post_ra>
